<compile_context>
chip_gen: v7x
topology: tpu7x:2x2x1
jax: 0.10.0
libtpu: 0.0.40
codegen_flags: <defaults>
</compile_context>

<pallas_src>
import jax
import jax.numpy as jnp
from jax.experimental import pallas as pl
from jax.experimental.pallas import tpu as pltpu

K1 = 784          # input features (28*28), fed unpadded
OUT = 10          # true number of logits
OUT_PAD = 128     # lane-dense output slab (unmasked stores)
# Layer shapes as the kernel sees them (layer 4/5 zero-padded to 128 lanes).
LAYER_SIZES = [(K1, 512), (512, 256), (256, 128), (128, 128), (128, OUT_PAD)]


# ----------------------------- Pallas kernel -------------------------------
def mlp_kernel(x_ref,
               w1_ref, b1_ref,
               w2_ref, b2_ref,
               w3_ref, b3_ref,
               w4_ref, b4_ref,
               w5_ref, b5_ref,
               out_ref):
    """Fused 784->512->256->128->128(pad)->128(pad) MLP with ReLU.

    Matmuls run in bf16 on the MXU with f32 accumulation; bias add + ReLU stay
    in f32 (v5e has no bf16 VALU; on v6e/v7x the VPU is not the binding slot),
    then cast back to bf16 for the next dot.
    """
    # In-kernel f32 -> bf16 cast (VPU) instead of a separate XLA pad/cast op.
    h = x_ref[...].astype(jnp.bfloat16)

    def dense(h_bf16, w_ref, b_ref, relu):
        y = jnp.dot(h_bf16, w_ref[...],
                    preferred_element_type=jnp.float32) + b_ref[...]
        if relu:
            y = jnp.maximum(y, 0.0)
        return y

    h = dense(h, w1_ref, b1_ref, relu=True).astype(jnp.bfloat16)
    h = dense(h, w2_ref, b2_ref, relu=True).astype(jnp.bfloat16)
    h = dense(h, w3_ref, b3_ref, relu=True).astype(jnp.bfloat16)
    h = dense(h, w4_ref, b4_ref, relu=True).astype(jnp.bfloat16)
    h = dense(h, w5_ref, b5_ref, relu=False)          # f32 (TB, 128)
    out_ref[...] = h.astype(out_ref.dtype)


# ------------------------------ JAX wrapper ---------------------------------
def _round_up(n, m):
    return ((n + m - 1) // m) * m


def _pick_tb(B):
    """Batch tile: scale with B, keep >= 4 grid steps at large B (v7x 2 TCs)."""
    if B <= 32:
        return _round_up(B, 8)                      # single small tile
    return max(128, min(1024, _round_up(B // 4, 128)))


@jax.jit
def mnist_net_forward(x, prepped_params):
    """x: (B, 1, 28, 28) or (B, 784) float32. Returns (B, 10) float32 logits.

    prepped_params: output of prepare_params() (bf16 weights / f32 biases,
    layer 4/5 zero-padded to 128 lanes).
    """
    x = x.reshape(-1, K1).astype(jnp.float32)        # same as torch x.view(-1, 784)
    B = x.shape[0]

    TB = _pick_tb(B)
    B_pad = _round_up(B, TB)
    if B_pad != B:
        x = jnp.pad(x, ((0, B_pad - B), (0, 0)))     # batch rows only; no K pad

    grid = (B_pad // TB,)

    # Weights/biases have constant index maps -> resident in VMEM across the
    # whole (parallel) batch grid; only the x/out tiles stream.
    in_specs = [pl.BlockSpec((TB, K1), lambda i: (i, 0))]
    for (kin, kout) in LAYER_SIZES:
        in_specs.append(pl.BlockSpec((kin, kout), lambda i: (0, 0)))
        in_specs.append(pl.BlockSpec((1, kout), lambda i: (0, 0)))

    flops = 2 * B_pad * sum(kin * kout for kin, kout in LAYER_SIZES)
    bytes_accessed = (B_pad * K1 * 4
                      + sum(kin * kout * 2 + kout * 4 for kin, kout in LAYER_SIZES)
                      + B_pad * OUT_PAD * 4)

    args = [x]
    for w, b in prepped_params:
        args += [w, b]

    out_pad = pl.pallas_call(
        mlp_kernel,
        out_shape=jax.ShapeDtypeStruct((B_pad, OUT_PAD), jnp.float32),
        grid_spec=pltpu.PrefetchScalarGridSpec(
            num_scalar_prefetch=0,
            grid=grid,
            in_specs=in_specs,
            out_specs=pl.BlockSpec((TB, OUT_PAD), lambda i: (i, 0)),
        ),
        compiler_params=pltpu.CompilerParams(
            dimension_semantics=("parallel",)),
        cost_estimate=pl.CostEstimate(
            flops=flops, transcendentals=0, bytes_accessed=bytes_accessed),
    )(*args)

    return out_pad[:B, :OUT]


# --------------------------- parameter handling ------------------------------
def init_params(key):
    """Deterministic init matching PyTorch Linear default: U(-1/sqrt(fan_in), +1/sqrt(fan_in)).
    Weights stored as (in_features, out_features); biases as (1, out_features)."""
    sizes = [(784, 512), (512, 256), (256, 128), (128, 64), (64, 10)]
    params = []
    for (fan_in, fan_out) in sizes:
        key, kw, kb = jax.random.split(key, 3)
        bound = 1.0 / jnp.sqrt(fan_in)
        w = jax.random.uniform(kw, (fan_in, fan_out), jnp.float32, -bound, bound)
        b = jax.random.uniform(kb, (1, fan_out), jnp.float32, -bound, bound)
        params.append((w, b))
    return params


def prepare_params(params):
    """One-time pad/cast (hoisted out of the jitted forward).

    Pads layer 4's output and layer 5's in/out to 128 lanes (zero padding is
    exact: padded activations are ReLU(0)=0 and multiply zero weight rows),
    casts weights to bf16 for the MXU, keeps biases f32 for the f32 epilogue.
    """
    (w1, b1), (w2, b2), (w3, b3), (w4, b4), (w5, b5) = params
    w4p = jnp.pad(w4, ((0, 0), (0, 128 - 64)))
    b4p = jnp.pad(b4, ((0, 0), (0, 128 - 64)))
    w5p = jnp.pad(w5, ((0, 128 - 64), (0, OUT_PAD - OUT)))
    b5p = jnp.pad(b5, ((0, 0), (0, OUT_PAD - OUT)))
    ws = [w1, w2, w3, w4p, w5p]
    bs = [b1, b2, b3, b4p, b5p]
    return [(w.astype(jnp.bfloat16), b.astype(jnp.float32))
            for w, b in zip(ws, bs)]


def reference_forward(x, params):
    """Pure-JAX reference mirroring the kernel numerics (bf16 matmul inputs, f32 accum)."""
    h = x.reshape(-1, K1)

    def dense(h, w, b, relu):
        y = jnp.dot(h.astype(jnp.bfloat16), w.astype(jnp.bfloat16),
                    preferred_element_type=jnp.float32) + b
        return jnp.maximum(y, 0.0) if relu else y

    (w1, b1), (w2, b2), (w3, b3), (w4, b4), (w5, b5) = params
    h = dense(h, w1, b1, True)
    h = dense(h, w2, b2, True)
    h = dense(h, w3, b3, True)
    h = dense(h, w4, b4, True)
    return dense(h, w5, b5, False)


if __name__ == "__main__":
    key = jax.random.PRNGKey(0)
    key, kx = jax.random.split(key)

    # Small MNIST-like input: batch=2, NCHW (2, 1, 28, 28)
    x = jax.random.normal(kx, (2, 1, 28, 28), jnp.float32)
    params = init_params(key)
    prepped = prepare_params(params)          # one-time pad/cast, outside jit

    out = mnist_net_forward(x, prepped)
    out = jax.block_until_ready(out)

    ref = reference_forward(x, params)
    assert out.shape == (2, 10), out.shape
    # bf16 matmul inputs -> looser tolerance than a pure-f32 check.
    assert jnp.allclose(out, ref, atol=1e-2, rtol=1e-2), "mismatch vs reference"

    print("KERNEL_OK")
</pallas_src>

<mosaic_0001>
module attributes {stable_mosaic.version = 11 : i64} {
  func.func @mlp_kernel(%arg0: i32, %arg1: memref<8x784xf32, #tpu.memory_space<vmem>>, %arg2: memref<784x512xbf16, #tpu.memory_space<vmem>>, %arg3: memref<1x512xf32, #tpu.memory_space<vmem>>, %arg4: memref<512x256xbf16, #tpu.memory_space<vmem>>, %arg5: memref<1x256xf32, #tpu.memory_space<vmem>>, %arg6: memref<256x128xbf16, #tpu.memory_space<vmem>>, %arg7: memref<1x128xf32, #tpu.memory_space<vmem>>, %arg8: memref<128x128xbf16, #tpu.memory_space<vmem>>, %arg9: memref<1x128xf32, #tpu.memory_space<vmem>>, %arg10: memref<128x128xbf16, #tpu.memory_space<vmem>>, %arg11: memref<1x128xf32, #tpu.memory_space<vmem>>, %arg12: memref<8x128xf32, #tpu.memory_space<vmem>>) attributes {dimension_semantics = [#tpu.dimension_semantics<parallel>], iteration_bounds = array<i64: 1>, scalar_prefetch = 0 : i64, scratch_operands = 0 : i64, tpu.core_type = #tpu.core_type<tc>, window_params = [{transform_indices = @transform_0, window_bounds = array<i64: 8, 784>}, {pipeline_mode = #tpu.pipeline_mode<synchronous>, transform_indices = @transform_1, window_bounds = array<i64: 784, 512>}, {pipeline_mode = #tpu.pipeline_mode<synchronous>, transform_indices = @transform_2, window_bounds = array<i64: 1, 512>}, {pipeline_mode = #tpu.pipeline_mode<synchronous>, transform_indices = @transform_3, window_bounds = array<i64: 512, 256>}, {pipeline_mode = #tpu.pipeline_mode<synchronous>, transform_indices = @transform_4, window_bounds = array<i64: 1, 256>}, {pipeline_mode = #tpu.pipeline_mode<synchronous>, transform_indices = @transform_5, window_bounds = array<i64: 256, 128>}, {pipeline_mode = #tpu.pipeline_mode<synchronous>, transform_indices = @transform_6, window_bounds = array<i64: 1, 128>}, {pipeline_mode = #tpu.pipeline_mode<synchronous>, transform_indices = @transform_7, window_bounds = array<i64: 128, 128>}, {pipeline_mode = #tpu.pipeline_mode<synchronous>, transform_indices = @transform_8, window_bounds = array<i64: 1, 128>}, {pipeline_mode = #tpu.pipeline_mode<synchronous>, transform_indices = @transform_9, window_bounds = array<i64: 128, 128>}, {pipeline_mode = #tpu.pipeline_mode<synchronous>, transform_indices = @transform_10, window_bounds = array<i64: 1, 128>}, {transform_indices = @transform_11, window_bounds = array<i64: 8, 128>}]} {
    %c0 = arith.constant 0 : index
    %c0_0 = arith.constant 0 : index
    %0 = vector.load %arg1[%c0, %c0_0] : memref<8x784xf32, #tpu.memory_space<vmem>>, vector<8x784xf32>
    %1 = arith.truncf %0 : vector<8x784xf32> to vector<8x784xbf16>
    %c0_1 = arith.constant 0 : index
    %c0_2 = arith.constant 0 : index
    %2 = vector.load %arg2[%c0_1, %c0_2] : memref<784x512xbf16, #tpu.memory_space<vmem>>, vector<784x512xbf16>
    %cst = arith.constant dense<0.000000e+00> : vector<8x512xf32>
    %3 = tpu.matmul %1, %2, %cst {dimension_numbers = #tpu.dot_dimension_numbers<[1], [0], [0], [1], [0, 0, 1, 1], [], []>} : vector<8x784xbf16>, vector<784x512xbf16>, vector<8x512xf32> -> vector<8x512xf32>
    %c0_3 = arith.constant 0 : index
    %c0_4 = arith.constant 0 : index
    %4 = vector.load %arg3[%c0_3, %c0_4] : memref<1x512xf32, #tpu.memory_space<vmem>>, vector<1x512xf32>
    %5 = vector.broadcast %4 : vector<1x512xf32> to vector<8x512xf32>
    %6 = arith.addf %3, %5 : vector<8x512xf32>
    %cst_5 = arith.constant 0.000000e+00 : f32
    %7 = vector.broadcast %cst_5 : f32 to vector<8x512xf32>
    %8 = arith.maximumf %6, %7 : vector<8x512xf32>
    %9 = arith.truncf %8 : vector<8x512xf32> to vector<8x512xbf16>
    %c0_6 = arith.constant 0 : index
    %c0_7 = arith.constant 0 : index
    %10 = vector.load %arg4[%c0_6, %c0_7] : memref<512x256xbf16, #tpu.memory_space<vmem>>, vector<512x256xbf16>
    %cst_8 = arith.constant dense<0.000000e+00> : vector<8x256xf32>
    %11 = tpu.matmul %9, %10, %cst_8 {dimension_numbers = #tpu.dot_dimension_numbers<[1], [0], [0], [1], [0, 0, 1, 1], [], []>} : vector<8x512xbf16>, vector<512x256xbf16>, vector<8x256xf32> -> vector<8x256xf32>
    %c0_9 = arith.constant 0 : index
    %c0_10 = arith.constant 0 : index
    %12 = vector.load %arg5[%c0_9, %c0_10] : memref<1x256xf32, #tpu.memory_space<vmem>>, vector<1x256xf32>
    %13 = vector.broadcast %12 : vector<1x256xf32> to vector<8x256xf32>
    %14 = arith.addf %11, %13 : vector<8x256xf32>
    %cst_11 = arith.constant 0.000000e+00 : f32
    %15 = vector.broadcast %cst_11 : f32 to vector<8x256xf32>
    %16 = arith.maximumf %14, %15 : vector<8x256xf32>
    %17 = arith.truncf %16 : vector<8x256xf32> to vector<8x256xbf16>
    %c0_12 = arith.constant 0 : index
    %c0_13 = arith.constant 0 : index
    %18 = vector.load %arg6[%c0_12, %c0_13] : memref<256x128xbf16, #tpu.memory_space<vmem>>, vector<256x128xbf16>
    %cst_14 = arith.constant dense<0.000000e+00> : vector<8x128xf32>
    %19 = tpu.matmul %17, %18, %cst_14 {dimension_numbers = #tpu.dot_dimension_numbers<[1], [0], [0], [1], [0, 0, 1, 1], [], []>} : vector<8x256xbf16>, vector<256x128xbf16>, vector<8x128xf32> -> vector<8x128xf32>
    %c0_15 = arith.constant 0 : index
    %c0_16 = arith.constant 0 : index
    %20 = vector.load %arg7[%c0_15, %c0_16] : memref<1x128xf32, #tpu.memory_space<vmem>>, vector<1x128xf32>
    %21 = vector.broadcast %20 : vector<1x128xf32> to vector<8x128xf32>
    %22 = arith.addf %19, %21 : vector<8x128xf32>
    %cst_17 = arith.constant 0.000000e+00 : f32
    %23 = vector.broadcast %cst_17 : f32 to vector<8x128xf32>
    %24 = arith.maximumf %22, %23 : vector<8x128xf32>
    %25 = arith.truncf %24 : vector<8x128xf32> to vector<8x128xbf16>
    %c0_18 = arith.constant 0 : index
    %c0_19 = arith.constant 0 : index
    %26 = vector.load %arg8[%c0_18, %c0_19] : memref<128x128xbf16, #tpu.memory_space<vmem>>, vector<128x128xbf16>
    %cst_20 = arith.constant dense<0.000000e+00> : vector<8x128xf32>
    %27 = tpu.matmul %25, %26, %cst_20 {dimension_numbers = #tpu.dot_dimension_numbers<[1], [0], [0], [1], [0, 0, 1, 1], [], []>} : vector<8x128xbf16>, vector<128x128xbf16>, vector<8x128xf32> -> vector<8x128xf32>
    %c0_21 = arith.constant 0 : index
    %c0_22 = arith.constant 0 : index
    %28 = vector.load %arg9[%c0_21, %c0_22] : memref<1x128xf32, #tpu.memory_space<vmem>>, vector<1x128xf32>
    %29 = vector.broadcast %28 : vector<1x128xf32> to vector<8x128xf32>
    %30 = arith.addf %27, %29 : vector<8x128xf32>
    %cst_23 = arith.constant 0.000000e+00 : f32
    %31 = vector.broadcast %cst_23 : f32 to vector<8x128xf32>
    %32 = arith.maximumf %30, %31 : vector<8x128xf32>
    %33 = arith.truncf %32 : vector<8x128xf32> to vector<8x128xbf16>
    %c0_24 = arith.constant 0 : index
    %c0_25 = arith.constant 0 : index
    %34 = vector.load %arg10[%c0_24, %c0_25] : memref<128x128xbf16, #tpu.memory_space<vmem>>, vector<128x128xbf16>
    %cst_26 = arith.constant dense<0.000000e+00> : vector<8x128xf32>
    %35 = tpu.matmul %33, %34, %cst_26 {dimension_numbers = #tpu.dot_dimension_numbers<[1], [0], [0], [1], [0, 0, 1, 1], [], []>} : vector<8x128xbf16>, vector<128x128xbf16>, vector<8x128xf32> -> vector<8x128xf32>
    %c0_27 = arith.constant 0 : index
    %c0_28 = arith.constant 0 : index
    %36 = vector.load %arg11[%c0_27, %c0_28] : memref<1x128xf32, #tpu.memory_space<vmem>>, vector<1x128xf32>
    %37 = vector.broadcast %36 : vector<1x128xf32> to vector<8x128xf32>
    %38 = arith.addf %35, %37 : vector<8x128xf32>
    %c0_29 = arith.constant 0 : index
    %c0_30 = arith.constant 0 : index
    %39 = vector.load %arg12[%c0_29, %c0_30] : memref<8x128xf32, #tpu.memory_space<vmem>>, vector<8x128xf32>
    tpu.vector_store %arg12[%c0_29, %c0_30], %38 {strides = array<i32>} : memref<8x128xf32, #tpu.memory_space<vmem>>, vector<8x128xf32>,
    return
  }
  func.func @transform_0(%arg0: i32) -> (i32, i32) {
    %c0_i32 = arith.constant 0 : i32
    %c0_i32_0 = arith.constant 0 : i32
    return %arg0, %c0_i32 : i32, i32
  }
  func.func @transform_1(%arg0: i32) -> (i32, i32) {
    %c0_i32 = arith.constant 0 : i32
    %c0_i32_0 = arith.constant 0 : i32
    %c0_i32_1 = arith.constant 0 : i32
    return %c0_i32, %c0_i32_0 : i32, i32
  }
  func.func @transform_2(%arg0: i32) -> (i32, i32) {
    %c0_i32 = arith.constant 0 : i32
    %c0_i32_0 = arith.constant 0 : i32
    %c0_i32_1 = arith.constant 0 : i32
    return %c0_i32, %c0_i32_0 : i32, i32
  }
  func.func @transform_3(%arg0: i32) -> (i32, i32) {
    %c0_i32 = arith.constant 0 : i32
    %c0_i32_0 = arith.constant 0 : i32
    %c0_i32_1 = arith.constant 0 : i32
    return %c0_i32, %c0_i32_0 : i32, i32
  }
  func.func @transform_4(%arg0: i32) -> (i32, i32) {
    %c0_i32 = arith.constant 0 : i32
    %c0_i32_0 = arith.constant 0 : i32
    %c0_i32_1 = arith.constant 0 : i32
    return %c0_i32, %c0_i32_0 : i32, i32
  }
  func.func @transform_5(%arg0: i32) -> (i32, i32) {
    %c0_i32 = arith.constant 0 : i32
    %c0_i32_0 = arith.constant 0 : i32
    %c0_i32_1 = arith.constant 0 : i32
    return %c0_i32, %c0_i32_0 : i32, i32
  }
  func.func @transform_6(%arg0: i32) -> (i32, i32) {
    %c0_i32 = arith.constant 0 : i32
    %c0_i32_0 = arith.constant 0 : i32
    %c0_i32_1 = arith.constant 0 : i32
    return %c0_i32, %c0_i32_0 : i32, i32
  }
  func.func @transform_7(%arg0: i32) -> (i32, i32) {
    %c0_i32 = arith.constant 0 : i32
    %c0_i32_0 = arith.constant 0 : i32
    %c0_i32_1 = arith.constant 0 : i32
    return %c0_i32, %c0_i32_0 : i32, i32
  }
  func.func @transform_8(%arg0: i32) -> (i32, i32) {
    %c0_i32 = arith.constant 0 : i32
    %c0_i32_0 = arith.constant 0 : i32
    %c0_i32_1 = arith.constant 0 : i32
    return %c0_i32, %c0_i32_0 : i32, i32
  }
  func.func @transform_9(%arg0: i32) -> (i32, i32) {
    %c0_i32 = arith.constant 0 : i32
    %c0_i32_0 = arith.constant 0 : i32
    %c0_i32_1 = arith.constant 0 : i32
    return %c0_i32, %c0_i32_0 : i32, i32
  }
  func.func @transform_10(%arg0: i32) -> (i32, i32) {
    %c0_i32 = arith.constant 0 : i32
    %c0_i32_0 = arith.constant 0 : i32
    %c0_i32_1 = arith.constant 0 : i32
    return %c0_i32, %c0_i32_0 : i32, i32
  }
  func.func @transform_11(%arg0: i32) -> (i32, i32) {
    %c0_i32 = arith.constant 0 : i32
    %c0_i32_0 = arith.constant 0 : i32
    return %arg0, %c0_i32 : i32, i32
  }
}

</mosaic_0001>

<bundles_post_ra>
// kernel: mnist_net_forward.1
= control target key start
LH: loop header
LB: loop body
LE: loop exit
PB: predicated region body
PF: predicated region fallthrough
CT: control target
= control target key end

     0   :  { %16 = vsyncpa [#allocation3], 0  ;;  %s3677_s0 = inlined_call_operand.vmem [shape: f32[8,784], index: 0, kind: input, shape index: {}]   ;;  %s3678_s1 = inlined_call_operand.hbm [shape: bf16[784,512], index: 1, kind: input, shape index: {}]   ;;  %s3679_s2 = inlined_call_operand.vmem [shape: f32[1,512], index: 2, kind: input, shape index: {}]   ;;  %s3680_s3 = inlined_call_operand.hbm [shape: bf16[512,256], index: 3, kind: input, shape index: {}]   ;;  %s3681_s4 = inlined_call_operand.vmem [shape: f32[1,256], index: 4, kind: input, shape index: {}]   ;;  %s3682_s5 = inlined_call_operand.vmem [shape: bf16[256,128], index: 5, kind: input, shape index: {}]   ;;  %s3683_s6 = inlined_call_operand.vmem [shape: f32[1,128], index: 6, kind: input, shape index: {}]   ;;  %s3684_s7 = inlined_call_operand.vmem [shape: bf16[128,128], index: 7, kind: input, shape index: {}]   ;;  %s3685_s8 = inlined_call_operand.vmem [shape: f32[1,128], index: 8, kind: input, shape index: {}]   ;;  %s3686_s9 = inlined_call_operand.vmem [shape: bf16[128,128], index: 9, kind: input, shape index: {}]   ;;  %s3687_s10 = inlined_call_operand.vmem [shape: f32[1,128], index: 10, kind: input, shape index: {}]   ;;  %s3688_s11 = inlined_call_operand.vmem [shape: f32[8,128], index: 11, kind: output, shape index: {}]  }
   0x1   :  { %17 = vsyncpa [#allocation5], 0  ;;  %s3397_s17 = smov [#allocation2]   ;;  %s3349_s21 = scalar_lea.hbm %s3678_s1, 25088 }
   0x2   :  { %s25_s18 = sshll.u32 %s3397_s17, 4  ;;  %p3350_p0 = scmp.ne.s32.totalorder %s3678_s1, %s3349_s21  ;;  %s26_s18 = int_to_ptr.vmem [resolvable:$true] %s25_s18 }
   0x3   :  { %p3353_p1 = scmp.lt.u32.totalorder %s3349_s21, %s3678_s1 }
   0x5   :  { %p3355_p2 = pnand %p3353_p1, %p3350_p0 }
   0x7   :  { %3358 = shalt.err (!%p3355_p2)
}
   0x8   :  { %s3359_s26 = scalar_lea.vmem %s26_s18, 25088  ;;  %p3364_p4 = scmp.lt.s32.totalorder %s26_s18, %s26_s18 }
   0x9   :  { %p3360_p3 = scmp.ne.s32.totalorder %s26_s18, %s3359_s26  ;;  %p3365_p5 = scmp.lt.s32.totalorder %s3359_s26, %s3359_s26 }
   0xb   :  { %p3366_p6 = por %p3365_p5, %p3364_p4 }
   0xd   :  { %p3367_p7 = pnand %p3366_p6, %p3360_p3 }
   0xf   :  { %3370 = shalt.err (!%p3367_p7)
}
  0x10   :  { %s3398_s27 = smov 256   ;;  %s3399_s28 = smov 16  }
  0x11   :  { %31 = dma.hbm_to_vmem [thread:$0]  %s3678_s1, 25088, %s26_s18, [#allocation3], %s3398_s27, %s3398_s27, %s3399_s28  }
  0x12   :  { %s3400_s12 = smov [#allocation4]   ;;  %s3371_s16 = scalar_lea.hbm %s3680_s3, 8192 }
  0x13   :  { %s39_s13 = sshll.u32 %s3400_s12, 4  ;;  %p3372_p8 = scmp.ne.s32.totalorder %s3680_s3, %s3371_s16  ;;  %s40_s13 = int_to_ptr.vmem [resolvable:$true] %s39_s13 }
  0x14   :  { %p3375_p9 = scmp.lt.u32.totalorder %s3371_s16, %s3680_s3 }
  0x16   :  { %p3377_p10 = pnand %p3375_p9, %p3372_p8 }
  0x18   :  { %3380 = shalt.err (!%p3377_p10)
}
  0x19   :  { %s3381_s22 = scalar_lea.vmem %s40_s13, 8192  ;;  %p3386_p12 = scmp.lt.s32.totalorder %s40_s13, %s40_s13 }
  0x1a   :  { %p3382_p11 = scmp.ne.s32.totalorder %s40_s13, %s3381_s22  ;;  %p3387_p13 = scmp.lt.s32.totalorder %s3381_s22, %s3381_s22 }
  0x1c   :  { %p3388_p0 = por %p3387_p13, %p3386_p12 }
  0x1e   :  { %p3389_p1 = pnand %p3388_p0, %p3382_p11 }
  0x20   :  { %3392 = shalt.err (!%p3389_p1)
}
  0x21   :  { %s3401_s1 = smov 128   ;;  %s3402_s18 = smov 8  }
  0x22   :  { %45 = dma.hbm_to_vmem [thread:$0]  %s3680_s3, 8192, %s40_s13, [#allocation5], %s3401_s1, %s3401_s1, %s3402_s18  }
  0x23   :  { %3393 = dma.done.wait [#allocation3], 25088  }
  0x24   :  { %3394 = vsyncadd [#allocation3], 4294942208 }
  0x25   :  { %3395 = dma.done.wait [#allocation5], 8192  }
  0x26   :  { %3396 = vsyncadd [#allocation5], 4294959104  ;;  %v3403_v0 = vmov 0   ;;  %v2927_v1 = vld [vmem:[#allocation2 + $0x4] ss:$16 sps:$4 sm:$0xff]   ;;  %vm1279_vm0 = vcmask 130048  }
  0x27   :  { %1438 = vmatprep.mubr.bf16.mxu1 %v3403_v0  ;;  %v2929_v2 = vld [vmem:[#allocation2 + $0x604] ss:$16 sps:$4 sm:$0xff]   ;;  %1283 = vmatprep.subr.bf16.mxu0 %v2927_v1  ;;  %v2931_v3 = vld [vmem:[#allocation2] ss:$16 sps:$4 sm:$0xff]   ;;  %v2935_v6 = vld [vmem:[#allocation2 + $0x8] ss:$16 sps:$4 sm:$0xff]  }
  0x28   :  { %v2932_v4 = vld [vmem:[#allocation2 + $0x600] ss:$16 sps:$4 sm:$0xff]   ;;  %1406 = vmatprep.subr.bf16.mxu1 %v2929_v2  ;;  %v2933_v5 = vld [vmem:[#allocation2 + $0x24] ss:$16 sps:$4 sm:$0xff]   ;;  %1284 = vmatpush1.bf16.msra.mxu0 %v2931_v3  ;;  %v2937_v7 = vld [vmem:[#allocation2 + $0xc] ss:$16 sps:$4 sm:$0xff]  }
  0x29   :  { %1407 = vmatpush1.bf16.msra.mxu1 %v2932_v4  ;;  %1285 = vmatprep.subr.bf16.mxu0 %v2933_v5  ;;  %v2938_v8 = vld [vmem:[#allocation2 + $0x20] ss:$16 sps:$4 sm:$0xff]   ;;  %v2939_v11 = vld [vmem:[#allocation2 + $0x44] ss:$16 sps:$4 sm:$0xff]   ;;  %v2941_v12 = vld [vmem:[#allocation2 + $0x28] ss:$16 sps:$4 sm:$0xff]  }
  0x2a   :  { %v73_v9 = vld [vmem:[%s3677_s0 + $0x30] sm:$0xff]  ;;  %1447 = vmatprep.subr.bf16.mxu1 %v2937_v7  ;;  %v2943_v13 = vld [vmem:[#allocation2 + $0x2c] ss:$16 sps:$4 sm:$0xff]   ;;  %v2947_v18 = vld [vmem:[#allocation2 + $0x48] ss:$16 sps:$4 sm:$0xff]   ;;  %vm3405_vm1 = vmmov 0  }
  0x2b   :  { %v3494_v10 = vpack.c.bf16 %v73_v9, %v73_v9  ;;  %v2944_v14 = vld [vmem:[#allocation2 + $0x40] ss:$16 sps:$4 sm:$0xff]   ;;  %v2945_v15 = vld [vmem:[#allocation2 + $0x64] ss:$16 sps:$4 sm:$0xff]   ;;  %v2949_v16 = vld [vmem:[#allocation2 + $0x4c] ss:$16 sps:$4 sm:$0xff]  }
  0x2c   :  { %1286 = vmatpush1.bf16.msra.mxu0 %v2938_v8  ;;  %v2950_v17 = vld [vmem:[#allocation2 + $0x60] ss:$16 sps:$4 sm:$0xff]   ;;  %v2951_v19 = vld [vmem:[#allocation2 + $0x84] ss:$16 sps:$4 sm:$0xff]   ;;  %v2955_v20 = vld [vmem:[#allocation2 + $0x6c] ss:$16 sps:$4 sm:$0xff]  }
  0x2d   :  { %2705 = vmatmul.mubr.msk.bf16.vlgmr.msra.gmra.mrb[0].mxu1 %vm1279_vm0, %v3494_v10  ;;  %1287 = vmatprep.subr.bf16.mxu0 %v2939_v11  ;;  %v2953_v21 = vld [vmem:[#allocation2 + $0x68] ss:$16 sps:$4 sm:$0xff]   ;;  %v2956_v22 = vld [vmem:[#allocation2 + $0x80] ss:$16 sps:$4 sm:$0xff]   ;;  %v2957_v23 = vld [vmem:[#allocation2 + $0xa4] ss:$16 sps:$4 sm:$0xff]  }
  0x2e   :  { %1448 = vmatpush1.bf16.msra.mxu1 %v2935_v6  ;;  %v2961_v24 = vld [vmem:[#allocation2 + $0x8c] ss:$16 sps:$4 sm:$0xff]   ;;  %v2962_v25 = vld [vmem:[#allocation2 + $0xa0] ss:$16 sps:$4 sm:$0xff]   ;;  %v2959_v26 = vld [vmem:[#allocation2 + $0x88] ss:$16 sps:$4 sm:$0xff]  }
  0x2f   :  { %1449 = vmatprep.subr.bf16.mxu1 %v2943_v13  ;;  %v2963_v27 = vld [vmem:[#allocation2 + $0xc4] ss:$16 sps:$4 sm:$0xff]   ;;  %v2967_v28 = vld [vmem:[#allocation2 + $0xac] ss:$16 sps:$4 sm:$0xff]   ;;  %v2965_v29 = vld [vmem:[#allocation2 + $0xa8] ss:$16 sps:$4 sm:$0xff]  }
  0x30   :  { %1288 = vmatpush1.bf16.msra.mxu0 %v2944_v14  ;;  %v2968_v30 = vld [vmem:[#allocation2 + $0xc0] ss:$16 sps:$4 sm:$0xff]   ;;  %v2969_v31 = vld [vmem:[#allocation2 + $0xe4] ss:$16 sps:$4 sm:$0xff]   ;;  %v2973_v32 = vld [vmem:[#allocation2 + $0xcc] ss:$16 sps:$4 sm:$0xff]  }
  0x31   :  { %1289 = vmatprep.subr.bf16.mxu0 %v2945_v15  ;;  %v2974_v33 = vld [vmem:[#allocation2 + $0xe0] ss:$16 sps:$4 sm:$0xff]   ;;  %v2971_v34 = vld [vmem:[#allocation2 + $0xc8] ss:$16 sps:$4 sm:$0xff]   ;;  %v2975_v35 = vld [vmem:[#allocation2 + $0x104] ss:$16 sps:$4 sm:$0xff]  }
  0x32   :  { %1450 = vmatpush1.bf16.msra.mxu1 %v2941_v12  ;;  %v2979_v36 = vld [vmem:[#allocation2 + $0xec] ss:$16 sps:$4 sm:$0xff]   ;;  %v2977_v37 = vld [vmem:[#allocation2 + $0xe8] ss:$16 sps:$4 sm:$0xff]   ;;  %v2980_v38 = vld [vmem:[#allocation2 + $0x100] ss:$16 sps:$4 sm:$0xff]  }
  0x33   :  { %1451 = vmatprep.subr.bf16.mxu1 %v2949_v16  ;;  %v2981_v39 = vld [vmem:[#allocation2 + $0x124] ss:$16 sps:$4 sm:$0xff]   ;;  %v2985_v40 = vld [vmem:[#allocation2 + $0x10c] ss:$16 sps:$4 sm:$0xff]   ;;  %v2986_v41 = vld [vmem:[#allocation2 + $0x120] ss:$16 sps:$4 sm:$0xff]  }
  0x34   :  { %1290 = vmatpush1.bf16.msra.mxu0 %v2950_v17  ;;  %v2983_v42 = vld [vmem:[#allocation2 + $0x108] ss:$16 sps:$4 sm:$0xff]   ;;  %v2987_v43 = vld [vmem:[#allocation2 + $0x144] ss:$16 sps:$4 sm:$0xff]   ;;  %v2991_v44 = vld [vmem:[#allocation2 + $0x12c] ss:$16 sps:$4 sm:$0xff]  }
  0x35   :  { %1291 = vmatprep.subr.bf16.mxu0 %v2951_v19  ;;  %v2989_v45 = vld [vmem:[#allocation2 + $0x128] ss:$16 sps:$4 sm:$0xff]   ;;  %v2992_v46 = vld [vmem:[#allocation2 + $0x140] ss:$16 sps:$4 sm:$0xff]   ;;  %v2993_v47 = vld [vmem:[#allocation2 + $0x164] ss:$16 sps:$4 sm:$0xff]  }
  0x36   :  { %1452 = vmatpush1.bf16.msra.mxu1 %v2947_v18  ;;  %v2997_v48 = vld [vmem:[#allocation2 + $0x14c] ss:$16 sps:$4 sm:$0xff]   ;;  %v2998_v50 = vld [vmem:[#allocation2 + $0x160] ss:$16 sps:$4 sm:$0xff]   ;;  %v2995_v52 = vld [vmem:[#allocation2 + $0x148] ss:$16 sps:$4 sm:$0xff]  }
  0x37   :  { %1453 = vmatprep.subr.bf16.mxu1 %v2955_v20  ;;  %v68_v49 = vld [vmem:[%s3677_s0 + $0x8] sm:$0xff]  ;;  %v2999_v53 = vld [vmem:[#allocation2 + $0x184] ss:$16 sps:$4 sm:$0xff]   ;;  %v3004_v56 = vld [vmem:[#allocation2 + $0x180] ss:$16 sps:$4 sm:$0xff]  }
  0x38   :  { %1292 = vmatpush1.bf16.msra.mxu0 %v2956_v22  ;;  %v75_v51 = vpack.c.bf16 %v68_v49, %v68_v49  ;;  %v3003_v54 = vld [vmem:[#allocation2 + $0x16c] ss:$16 sps:$4 sm:$0xff]   ;;  %v3001_v55 = vld [vmem:[#allocation2 + $0x168] ss:$16 sps:$4 sm:$0xff]   ;;  %v3005_v57 = vld [vmem:[#allocation2 + $0x1a4] ss:$16 sps:$4 sm:$0xff]  }
  0x39   :  { %1293 = vmatprep.subr.bf16.mxu0 %v2957_v23  ;;  %v3009_v58 = vld [vmem:[#allocation2 + $0x18c] ss:$16 sps:$4 sm:$0xff]   ;;  %v3007_v59 = vld [vmem:[#allocation2 + $0x188] ss:$16 sps:$4 sm:$0xff]   ;;  %v3010_v60 = vld [vmem:[#allocation2 + $0x1a0] ss:$16 sps:$4 sm:$0xff]  }
  0x3a   :  { %1454 = vmatpush1.bf16.msra.mxu1 %v2953_v21  ;;  %1315 = vmatprep.mubr.bf16.mxu0 %v75_v51  ;;  %v3011_v61 = vld [vmem:[#allocation2 + $0x1c4] ss:$16 sps:$4 sm:$0xff]   ;;  %v3015_v62 = vld [vmem:[#allocation2 + $0x1ac] ss:$16 sps:$4 sm:$0xff]   ;;  %v3013_v63 = vld [vmem:[#allocation2 + $0x1a8] ss:$16 sps:$4 sm:$0xff]  }
  0x3b   :  { %1455 = vmatprep.subr.bf16.mxu1 %v2961_v24  ;;  %1479 = vmatprep.mubr.bf16.mxu1 %v75_v51  ;;  %v3016_v1 = vld [vmem:[#allocation2 + $0x1c0] ss:$16 sps:$4 sm:$0xff]   ;;  %v3017_v2 = vld [vmem:[#allocation2 + $0x1e4] ss:$16 sps:$4 sm:$0xff]   ;;  %v3021_v3 = vld [vmem:[#allocation2 + $0x1cc] ss:$16 sps:$4 sm:$0xff]  }
  0x3c   :  { %1294 = vmatpush1.bf16.msra.mxu0 %v2962_v25  ;;  %v3019_v4 = vld [vmem:[#allocation2 + $0x1c8] ss:$16 sps:$4 sm:$0xff]   ;;  %v3022_v5 = vld [vmem:[#allocation2 + $0x1e0] ss:$16 sps:$4 sm:$0xff]   ;;  %v3025_v7 = vld [vmem:[#allocation2 + $0x204] ss:$16 sps:$4 sm:$0xff]  }
  0x3d   :  { %1295 = vmatprep.subr.bf16.mxu0 %v2963_v27  ;;  %v67_v6 = vld [vmem:[%s3677_s0] sm:$0xff]  ;;  %v3028_v8 = vld [vmem:[#allocation2 + $0x1ec] ss:$16 sps:$4 sm:$0xff]   ;;  %v3026_v12 = vld [vmem:[#allocation2 + $0x1e8] ss:$16 sps:$4 sm:$0xff]  }
  0x3e   :  { %1456 = vmatpush1.bf16.msra.mxu1 %v2959_v26  ;;  %v74_v9 = vpack.c.bf16 %v67_v6, %v67_v6  ;;  %v3023_v11 = vld [vmem:[#allocation2 + $0x200] ss:$16 sps:$4 sm:$0xff]   ;;  %v3031_v13 = vld [vmem:[#allocation2 + $0x224] ss:$16 sps:$4 sm:$0xff]   ;;  %v3034_v14 = vld [vmem:[#allocation2 + $0x20c] ss:$16 sps:$4 sm:$0xff]  }
  0x3f   :  { %1457 = vmatprep.subr.bf16.mxu1 %v2967_v28  ;;  %v3029_v15 = vld [vmem:[#allocation2 + $0x220] ss:$16 sps:$4 sm:$0xff]   ;;  %v3032_v16 = vld [vmem:[#allocation2 + $0x208] ss:$16 sps:$4 sm:$0xff]   ;;  %v3037_v17 = vld [vmem:[#allocation2 + $0x244] ss:$16 sps:$4 sm:$0xff]  }
  0x40   :  { %1296 = vmatpush1.bf16.msra.mxu0 %v2968_v30  ;;  %v3040_v18 = vld [vmem:[#allocation2 + $0x22c] ss:$16 sps:$4 sm:$0xff]   ;;  %v3035_v19 = vld [vmem:[#allocation2 + $0x240] ss:$16 sps:$4 sm:$0xff]   ;;  %v3038_v20 = vld [vmem:[#allocation2 + $0x228] ss:$16 sps:$4 sm:$0xff]  }
  0x41   :  { %1297 = vmatprep.subr.bf16.mxu0 %v2969_v31  ;;  %v3043_v21 = vld [vmem:[#allocation2 + $0x264] ss:$16 sps:$4 sm:$0xff]   ;;  %v3046_v22 = vld [vmem:[#allocation2 + $0x24c] ss:$16 sps:$4 sm:$0xff]   ;;  %v3041_v23 = vld [vmem:[#allocation2 + $0x260] ss:$16 sps:$4 sm:$0xff]  }
  0x42   :  { %1458 = vmatpush1.bf16.msra.mxu1 %v2965_v29  ;;  %v3044_v24 = vld [vmem:[#allocation2 + $0x248] ss:$16 sps:$4 sm:$0xff]   ;;  %v3049_v25 = vld [vmem:[#allocation2 + $0x284] ss:$16 sps:$4 sm:$0xff]   ;;  %v3052_v26 = vld [vmem:[#allocation2 + $0x26c] ss:$16 sps:$4 sm:$0xff]  }
  0x43   :  { %1459 = vmatprep.subr.bf16.mxu1 %v2973_v32  ;;  %v3047_v27 = vld [vmem:[#allocation2 + $0x280] ss:$16 sps:$4 sm:$0xff]   ;;  %v3050_v28 = vld [vmem:[#allocation2 + $0x268] ss:$16 sps:$4 sm:$0xff]   ;;  %v3055_v29 = vld [vmem:[#allocation2 + $0x2a4] ss:$16 sps:$4 sm:$0xff]  }
  0x44   :  { %1298 = vmatpush1.bf16.msra.mxu0 %v2974_v33  ;;  %v3058_v30 = vld [vmem:[#allocation2 + $0x28c] ss:$16 sps:$4 sm:$0xff]   ;;  %v3053_v31 = vld [vmem:[#allocation2 + $0x2a0] ss:$16 sps:$4 sm:$0xff]   ;;  %v3056_v32 = vld [vmem:[#allocation2 + $0x288] ss:$16 sps:$4 sm:$0xff]  }
  0x45   :  { %1299 = vmatprep.subr.bf16.mxu0 %v2975_v35  ;;  %v3061_v33 = vld [vmem:[#allocation2 + $0x2c4] ss:$16 sps:$4 sm:$0xff]   ;;  %v70_v35 = vld [vmem:[%s3677_s0 + $0x18] sm:$0xff]  ;;  %v3077_v49 = vld [vmem:[#allocation2 + $0x320] ss:$16 sps:$4 sm:$0xff]  }
  0x46   :  { %1460 = vmatpush1.bf16.msra.mxu1 %v2971_v34  ;;  %v3064_v34 = vld [vmem:[#allocation2 + $0x2ac] ss:$16 sps:$4 sm:$0xff]   ;;  %v3085_v51 = vld [vmem:[#allocation2 + $0x344] ss:$16 sps:$4 sm:$0xff]   ;;  %v3107_v6 = vld [vmem:[#allocation2 + $0x3c0] ss:$16 sps:$4 sm:$0xff]  }
  0x47   :  { %1461 = vmatprep.subr.bf16.mxu1 %v2979_v36  ;;  %v77_v36 = vpack.c.bf16 %v70_v35, %v70_v35  ;;  %v3143_v35 = vld [vmem:[#allocation2 + $0x480] ss:$16 sps:$4 sm:$0xff]  }
  0x48   :  { %1300 = vmatpush1.bf16.msra.mxu0 %v2980_v38  ;;  %v3062_v38 = vld [vmem:[#allocation2 + $0x2a8] ss:$16 sps:$4 sm:$0xff]  }
  0x49   :  { %1301 = vmatprep.subr.bf16.mxu0 %v2981_v39  ;;  %v3067_v39 = vld [vmem:[#allocation2 + $0x2e4] ss:$16 sps:$4 sm:$0xff]  }
  0x4a   :  { %1462 = vmatpush1.bf16.msra.mxu1 %v2977_v37  ;;  %v3059_v37 = vld [vmem:[#allocation2 + $0x2c0] ss:$16 sps:$4 sm:$0xff]  }
  0x4b   :  { %1463 = vmatprep.subr.bf16.mxu1 %v2985_v40  ;;  %v3070_v40 = vld [vmem:[#allocation2 + $0x2cc] ss:$16 sps:$4 sm:$0xff]  }
  0x4c   :  { %1302 = vmatpush1.bf16.msra.mxu0 %v2986_v41  ;;  %v3065_v41 = vld [vmem:[#allocation2 + $0x2e0] ss:$16 sps:$4 sm:$0xff]  }
  0x4d   :  { %1303 = vmatprep.subr.bf16.mxu0 %v2987_v43  ;;  %v3073_v43 = vld [vmem:[#allocation2 + $0x304] ss:$16 sps:$4 sm:$0xff]  }
  0x4e   :  { %1464 = vmatpush1.bf16.msra.mxu1 %v2983_v42  ;;  %v3068_v42 = vld [vmem:[#allocation2 + $0x2c8] ss:$16 sps:$4 sm:$0xff]  }
  0x4f   :  { %1465 = vmatprep.subr.bf16.mxu1 %v2991_v44  ;;  %v3076_v44 = vld [vmem:[#allocation2 + $0x2ec] ss:$16 sps:$4 sm:$0xff]  }
  0x50   :  { %1304 = vmatpush1.bf16.msra.mxu0 %v2992_v46  ;;  %v3074_v46 = vld [vmem:[#allocation2 + $0x2e8] ss:$16 sps:$4 sm:$0xff]  }
  0x51   :  { %1305 = vmatprep.subr.bf16.mxu0 %v2993_v47  ;;  %v3079_v47 = vld [vmem:[#allocation2 + $0x324] ss:$16 sps:$4 sm:$0xff]  }
  0x52   :  { %1466 = vmatpush1.bf16.msra.mxu1 %v2989_v45  ;;  %v3071_v45 = vld [vmem:[#allocation2 + $0x300] ss:$16 sps:$4 sm:$0xff]  }
  0x53   :  { %1467 = vmatprep.subr.bf16.mxu1 %v2997_v48  ;;  %v3082_v48 = vld [vmem:[#allocation2 + $0x30c] ss:$16 sps:$4 sm:$0xff]  }
  0x54   :  { %1306 = vmatpush1.bf16.msra.mxu0 %v2998_v50  ;;  %v3080_v50 = vld [vmem:[#allocation2 + $0x308] ss:$16 sps:$4 sm:$0xff]  }
  0x55   :  { %1307 = vmatprep.subr.bf16.mxu0 %v2999_v53  ;;  %v3083_v53 = vld [vmem:[#allocation2 + $0x340] ss:$16 sps:$4 sm:$0xff]  }
  0x56   :  { %1468 = vmatpush1.bf16.msra.mxu1 %v2995_v52  ;;  %v3088_v52 = vld [vmem:[#allocation2 + $0x32c] ss:$16 sps:$4 sm:$0xff]  }
  0x57   :  { %1469 = vmatprep.subr.bf16.mxu1 %v3003_v54  ;;  %v3086_v54 = vld [vmem:[#allocation2 + $0x328] ss:$16 sps:$4 sm:$0xff]  }
  0x58   :  { %1308 = vmatpush1.bf16.msra.mxu0 %v3004_v56  ;;  %v3094_v56 = vld [vmem:[#allocation2 + $0x34c] ss:$16 sps:$4 sm:$0xff]  }
  0x59   :  { %1309 = vmatprep.subr.bf16.mxu0 %v3005_v57  ;;  %v3089_v57 = vld [vmem:[#allocation2 + $0x360] ss:$16 sps:$4 sm:$0xff]  }
  0x5a   :  { %1470 = vmatpush1.bf16.msra.mxu1 %v3001_v55  ;;  %v3091_v55 = vld [vmem:[#allocation2 + $0x364] ss:$16 sps:$4 sm:$0xff]  }
  0x5b   :  { %1471 = vmatprep.subr.bf16.mxu1 %v3009_v58  ;;  %v3092_v58 = vld [vmem:[#allocation2 + $0x348] ss:$16 sps:$4 sm:$0xff]  }
  0x5c   :  { %1310 = vmatpush1.bf16.msra.mxu0 %v3010_v60  ;;  %v3100_v60 = vld [vmem:[#allocation2 + $0x36c] ss:$16 sps:$4 sm:$0xff]  }
  0x5d   :  { %1311 = vmatprep.subr.bf16.mxu0 %v3011_v61  ;;  %v3095_v61 = vld [vmem:[#allocation2 + $0x380] ss:$16 sps:$4 sm:$0xff]  }
  0x5e   :  { %1472 = vmatpush1.bf16.msra.mxu1 %v3007_v59  ;;  %v3097_v59 = vld [vmem:[#allocation2 + $0x384] ss:$16 sps:$4 sm:$0xff]  }
  0x5f   :  { %1473 = vmatprep.subr.bf16.mxu1 %v3015_v62  ;;  %v3098_v62 = vld [vmem:[#allocation2 + $0x368] ss:$16 sps:$4 sm:$0xff]  }
  0x60   :  { %1312 = vmatpush1.bf16.msra.mxu0 %v3016_v1  ;;  %v3106_v1 = vld [vmem:[#allocation2 + $0x38c] ss:$16 sps:$4 sm:$0xff]  }
  0x61   :  { %1313 = vmatprep.subr.bf16.mxu0 %v3017_v2  ;;  %v3101_v2 = vld [vmem:[#allocation2 + $0x3a0] ss:$16 sps:$4 sm:$0xff]  }
  0x62   :  { %1474 = vmatpush1.bf16.msra.mxu1 %v3013_v63  ;;  %v3103_v63 = vld [vmem:[#allocation2 + $0x3a4] ss:$16 sps:$4 sm:$0xff]  }
  0x63   :  { %1475 = vmatprep.subr.bf16.mxu1 %v3021_v3  ;;  %v3104_v3 = vld [vmem:[#allocation2 + $0x388] ss:$16 sps:$4 sm:$0xff]  }
  0x64   :  { %1314 = vmatpush1.bf16.msra.mxu0 %v3022_v5  ;;  %v3112_v5 = vld [vmem:[#allocation2 + $0x3ac] ss:$16 sps:$4 sm:$0xff]  }
  0x65   :  { %1324 = vmatprep.subr.bf16.mxu0 %v3025_v7  ;;  %v3110_v7 = vld [vmem:[#allocation2 + $0x3a8] ss:$16 sps:$4 sm:$0xff]  }
  0x66   :  { %1476 = vmatpush1.bf16.msra.mxu1 %v3019_v4  ;;  %v3109_v4 = vld [vmem:[#allocation2 + $0x3c4] ss:$16 sps:$4 sm:$0xff]  }
  0x67   :  { %1477 = vmatprep.subr.bf16.mxu1 %v3028_v8  ;;  %1316 = vmatmul.mubr.bf16.vlgmr.msra.gmra.mrb[0].mxu0 %v74_v9  ;;  %v3115_v8 = vld [vmem:[#allocation2 + $0x3e4] ss:$16 sps:$4 sm:$0xff]  }
  0x68   :  { %1325 = vmatpush1.bf16.msra.mxu0 %v3023_v11  ;;  %1356 = vmatprep.mubr.bf16.mxu0 %v77_v36  ;;  %v3113_v11 = vld [vmem:[#allocation2 + $0x3e0] ss:$16 sps:$4 sm:$0xff]  }
  0x69   :  { %1326 = vmatprep.subr.bf16.mxu0 %v3031_v13  ;;  %v3116_v13 = vld [vmem:[#allocation2 + $0x3c8] ss:$16 sps:$4 sm:$0xff]  }
  0x6a   :  { %1478 = vmatpush1.bf16.msra.mxu1 %v3026_v12  ;;  %v69_v12 = vld [vmem:[%s3677_s0 + $0x10] sm:$0xff] }
  0x6b   :  { %1488 = vmatprep.subr.bf16.mxu1 %v3034_v14  ;;  %v3121_v14 = vld [vmem:[#allocation2 + $0x404] ss:$16 sps:$4 sm:$0xff]  }
  0x6c   :  { %1327 = vmatpush1.bf16.msra.mxu0 %v3029_v15  ;;  %v3124_v15 = vld [vmem:[#allocation2 + $0x3ec] ss:$16 sps:$4 sm:$0xff]  }
  0x6d   :  { %1480 = vmatmul.mubr.bf16.vlgmr.msra.gmra.mrb[4].mxu1 %v74_v9  ;;  %1328 = vmatprep.subr.bf16.mxu0 %v3037_v17  ;;  %v3118_v9 = vld [vmem:[#allocation2 + $0x3cc] ss:$16 sps:$4 sm:$0xff]   ;;  %v3119_v17 = vld [vmem:[#allocation2 + $0x400] ss:$16 sps:$4 sm:$0xff]  }
  0x6e   :  { %1489 = vmatpush1.bf16.msra.mxu1 %v3032_v16  ;;  %1520 = vmatprep.mubr.bf16.mxu1 %v77_v36  ;;  %v76_v16 = vpack.c.bf16 %v69_v12, %v69_v12  ;;  %v3146_v36 = vld [vmem:[#allocation2 + $0x468] ss:$16 sps:$4 sm:$0xff]   ;;  %v3208_v12 = vld [vmem:[#allocation2 + $0x5ac] ss:$16 sps:$4 sm:$0xff]  }
  0x6f   :  { %1490 = vmatprep.subr.bf16.mxu1 %v3040_v18  ;;  %v3122_v18 = vld [vmem:[#allocation2 + $0x3e8] ss:$16 sps:$4 sm:$0xff]  }
  0x70   :  { %1329 = vmatpush1.bf16.msra.mxu0 %v3035_v19  ;;  %v3127_v19 = vld [vmem:[#allocation2 + $0x424] ss:$16 sps:$4 sm:$0xff]  }
  0x71   :  { %1330 = vmatprep.subr.bf16.mxu0 %v3043_v21  ;;  %v3130_v21 = vld [vmem:[#allocation2 + $0x40c] ss:$16 sps:$4 sm:$0xff]  }
  0x72   :  { %1491 = vmatpush1.bf16.msra.mxu1 %v3038_v20  ;;  %v72_v20 = vld [vmem:[%s3677_s0 + $0x28] sm:$0xff] }
  0x73   :  { %1492 = vmatprep.subr.bf16.mxu1 %v3046_v22  ;;  %v79_v22 = vpack.c.bf16 %v72_v20, %v72_v20  ;;  %v3223_v20 = vld [vmem:[#allocation4 + $0x4] ss:$8 sps:$4 sm:$0xff]  }
  0x74   :  { %1331 = vmatpush1.bf16.msra.mxu0 %v3041_v23  ;;  %v3125_v23 = vld [vmem:[#allocation2 + $0x420] ss:$16 sps:$4 sm:$0xff]  }
  0x75   :  { %1332 = vmatprep.subr.bf16.mxu0 %v3049_v25  ;;  %v3133_v25 = vld [vmem:[#allocation2 + $0x444] ss:$16 sps:$4 sm:$0xff]  }
  0x76   :  { %1493 = vmatpush1.bf16.msra.mxu1 %v3044_v24  ;;  %v3128_v24 = vld [vmem:[#allocation2 + $0x408] ss:$16 sps:$4 sm:$0xff]  }
  0x77   :  { %1494 = vmatprep.subr.bf16.mxu1 %v3052_v26  ;;  %v3136_v26 = vld [vmem:[#allocation2 + $0x42c] ss:$16 sps:$4 sm:$0xff]  }
  0x78   :  { %1333 = vmatpush1.bf16.msra.mxu0 %v3047_v27  ;;  %v3131_v27 = vld [vmem:[#allocation2 + $0x440] ss:$16 sps:$4 sm:$0xff]  }
  0x79   :  { %1334 = vmatprep.subr.bf16.mxu0 %v3055_v29  ;;  %v3139_v29 = vld [vmem:[#allocation2 + $0x464] ss:$16 sps:$4 sm:$0xff]  }
  0x7a   :  { %1495 = vmatpush1.bf16.msra.mxu1 %v3050_v28  ;;  %v3134_v28 = vld [vmem:[#allocation2 + $0x428] ss:$16 sps:$4 sm:$0xff]  }
  0x7b   :  { %1496 = vmatprep.subr.bf16.mxu1 %v3058_v30  ;;  %v3142_v30 = vld [vmem:[#allocation2 + $0x44c] ss:$16 sps:$4 sm:$0xff]  }
  0x7c   :  { %1335 = vmatpush1.bf16.msra.mxu0 %v3053_v31  ;;  %v3137_v31 = vld [vmem:[#allocation2 + $0x460] ss:$16 sps:$4 sm:$0xff]  }
  0x7d   :  { %1336 = vmatprep.subr.bf16.mxu0 %v3061_v33  ;;  %v3145_v33 = vld [vmem:[#allocation2 + $0x484] ss:$16 sps:$4 sm:$0xff]  }
  0x7e   :  { %1497 = vmatpush1.bf16.msra.mxu1 %v3056_v32  ;;  %v3140_v32 = vld [vmem:[#allocation2 + $0x448] ss:$16 sps:$4 sm:$0xff]  }
  0x7f   :  { %1498 = vmatprep.subr.bf16.mxu1 %v3064_v34  ;;  %v3148_v34 = vld [vmem:[#allocation2 + $0x46c] ss:$16 sps:$4 sm:$0xff]  }
  0x80   :  { %1337 = vmatpush1.bf16.msra.mxu0 %v3059_v37  ;;  %v3151_v37 = vld [vmem:[#allocation2 + $0x4a4] ss:$16 sps:$4 sm:$0xff]  }
  0x81   :  { %1338 = vmatprep.subr.bf16.mxu0 %v3067_v39  ;;  %v3149_v39 = vld [vmem:[#allocation2 + $0x4a0] ss:$16 sps:$4 sm:$0xff]  }
  0x82   :  { %1499 = vmatpush1.bf16.msra.mxu1 %v3062_v38  ;;  %v3154_v38 = vld [vmem:[#allocation2 + $0x48c] ss:$16 sps:$4 sm:$0xff]  }
  0x83   :  { %1500 = vmatprep.subr.bf16.mxu1 %v3070_v40  ;;  %v3152_v40 = vld [vmem:[#allocation2 + $0x488] ss:$16 sps:$4 sm:$0xff]  }
  0x84   :  { %1339 = vmatpush1.bf16.msra.mxu0 %v3065_v41  ;;  %v3157_v41 = vld [vmem:[#allocation2 + $0x4c4] ss:$16 sps:$4 sm:$0xff]  }
  0x85   :  { %1340 = vmatprep.subr.bf16.mxu0 %v3073_v43  ;;  %v3155_v43 = vld [vmem:[#allocation2 + $0x4c0] ss:$16 sps:$4 sm:$0xff]  }
  0x86   :  { %1501 = vmatpush1.bf16.msra.mxu1 %v3068_v42  ;;  %v3160_v42 = vld [vmem:[#allocation2 + $0x4ac] ss:$16 sps:$4 sm:$0xff]  }
  0x87   :  { %1502 = vmatprep.subr.bf16.mxu1 %v3076_v44  ;;  %v3158_v44 = vld [vmem:[#allocation2 + $0x4a8] ss:$16 sps:$4 sm:$0xff]  }
  0x88   :  { %1341 = vmatpush1.bf16.msra.mxu0 %v3071_v45  ;;  %v3163_v45 = vld [vmem:[#allocation2 + $0x4e4] ss:$16 sps:$4 sm:$0xff]  }
  0x89   :  { %1342 = vmatprep.subr.bf16.mxu0 %v3079_v47  ;;  %v3161_v47 = vld [vmem:[#allocation2 + $0x4e0] ss:$16 sps:$4 sm:$0xff]  }
  0x8a   :  { %1503 = vmatpush1.bf16.msra.mxu1 %v3074_v46  ;;  %v3166_v46 = vld [vmem:[#allocation2 + $0x4cc] ss:$16 sps:$4 sm:$0xff]  }
  0x8b   :  { %1504 = vmatprep.subr.bf16.mxu1 %v3082_v48  ;;  %v3164_v48 = vld [vmem:[#allocation2 + $0x4c8] ss:$16 sps:$4 sm:$0xff]  }
  0x8c   :  { %1343 = vmatpush1.bf16.msra.mxu0 %v3077_v49  ;;  %v3169_v49 = vld [vmem:[#allocation2 + $0x504] ss:$16 sps:$4 sm:$0xff]  }
  0x8d   :  { %1344 = vmatprep.subr.bf16.mxu0 %v3085_v51  ;;  %v3167_v51 = vld [vmem:[#allocation2 + $0x500] ss:$16 sps:$4 sm:$0xff]  }
  0x8e   :  { %1505 = vmatpush1.bf16.msra.mxu1 %v3080_v50  ;;  %v3172_v50 = vld [vmem:[#allocation2 + $0x4ec] ss:$16 sps:$4 sm:$0xff]  }
  0x8f   :  { %1506 = vmatprep.subr.bf16.mxu1 %v3088_v52  ;;  %v3170_v52 = vld [vmem:[#allocation2 + $0x4e8] ss:$16 sps:$4 sm:$0xff]  }
  0x90   :  { %1345 = vmatpush1.bf16.msra.mxu0 %v3083_v53  ;;  %v3175_v53 = vld [vmem:[#allocation2 + $0x524] ss:$16 sps:$4 sm:$0xff]  }
  0x91   :  { %1346 = vmatprep.subr.bf16.mxu0 %v3091_v55  ;;  %v3173_v55 = vld [vmem:[#allocation2 + $0x520] ss:$16 sps:$4 sm:$0xff]  }
  0x92   :  { %1507 = vmatpush1.bf16.msra.mxu1 %v3086_v54  ;;  %v3178_v54 = vld [vmem:[#allocation2 + $0x50c] ss:$16 sps:$4 sm:$0xff]  }
  0x93   :  { %1508 = vmatprep.subr.bf16.mxu1 %v3094_v56  ;;  %v3176_v56 = vld [vmem:[#allocation2 + $0x508] ss:$16 sps:$4 sm:$0xff]  }
  0x94   :  { %1347 = vmatpush1.bf16.msra.mxu0 %v3089_v57  ;;  %v3181_v57 = vld [vmem:[#allocation2 + $0x544] ss:$16 sps:$4 sm:$0xff]  }
  0x95   :  { %1348 = vmatprep.subr.bf16.mxu0 %v3097_v59  ;;  %v3179_v59 = vld [vmem:[#allocation2 + $0x540] ss:$16 sps:$4 sm:$0xff]  }
  0x96   :  { %1509 = vmatpush1.bf16.msra.mxu1 %v3092_v58  ;;  %v3184_v58 = vld [vmem:[#allocation2 + $0x52c] ss:$16 sps:$4 sm:$0xff]  }
  0x97   :  { %1510 = vmatprep.subr.bf16.mxu1 %v3100_v60  ;;  %v3182_v60 = vld [vmem:[#allocation2 + $0x528] ss:$16 sps:$4 sm:$0xff]  }
  0x98   :  { %1349 = vmatpush1.bf16.msra.mxu0 %v3095_v61  ;;  %v3187_v61 = vld [vmem:[#allocation2 + $0x564] ss:$16 sps:$4 sm:$0xff]  }
  0x99   :  { %1350 = vmatprep.subr.bf16.mxu0 %v3103_v63  ;;  %v3185_v63 = vld [vmem:[#allocation2 + $0x560] ss:$16 sps:$4 sm:$0xff]  }
  0x9a   :  { %1511 = vmatpush1.bf16.msra.mxu1 %v3098_v62  ;;  %v3190_v62 = vld [vmem:[#allocation2 + $0x54c] ss:$16 sps:$4 sm:$0xff]  }
  0x9b   :  { %1512 = vmatprep.subr.bf16.mxu1 %v3106_v1  ;;  %v3188_v1 = vld [vmem:[#allocation2 + $0x548] ss:$16 sps:$4 sm:$0xff]  }
  0x9c   :  { %1351 = vmatpush1.bf16.msra.mxu0 %v3101_v2  ;;  %v3193_v2 = vld [vmem:[#allocation2 + $0x584] ss:$16 sps:$4 sm:$0xff]  }
  0x9d   :  { %1352 = vmatprep.subr.bf16.mxu0 %v3109_v4  ;;  %v3191_v4 = vld [vmem:[#allocation2 + $0x580] ss:$16 sps:$4 sm:$0xff]  }
  0x9e   :  { %1513 = vmatpush1.bf16.msra.mxu1 %v3104_v3  ;;  %v3196_v3 = vld [vmem:[#allocation2 + $0x56c] ss:$16 sps:$4 sm:$0xff]  }
  0x9f   :  { %1514 = vmatprep.subr.bf16.mxu1 %v3112_v5  ;;  %v3194_v5 = vld [vmem:[#allocation2 + $0x568] ss:$16 sps:$4 sm:$0xff]  }
  0xa0   :  { %1353 = vmatpush1.bf16.msra.mxu0 %v3107_v6  ;;  %v3199_v6 = vld [vmem:[#allocation2 + $0x5a4] ss:$16 sps:$4 sm:$0xff]  }
  0xa1   :  { %1354 = vmatprep.subr.bf16.mxu0 %v3115_v8  ;;  %v3197_v8 = vld [vmem:[#allocation2 + $0x5a0] ss:$16 sps:$4 sm:$0xff]  }
  0xa2   :  { %1515 = vmatpush1.bf16.msra.mxu1 %v3110_v7  ;;  %v3202_v7 = vld [vmem:[#allocation2 + $0x58c] ss:$16 sps:$4 sm:$0xff]  }
  0xa3   :  { %1516 = vmatprep.subr.bf16.mxu1 %v3118_v9  ;;  %v3200_v9 = vld [vmem:[#allocation2 + $0x588] ss:$16 sps:$4 sm:$0xff]  }
  0xa4   :  { %1355 = vmatpush1.bf16.msra.mxu0 %v3113_v11  ;;  %v3205_v11 = vld [vmem:[#allocation2 + $0x5c4] ss:$16 sps:$4 sm:$0xff]  }
  0xa5   :  { %1365 = vmatprep.subr.bf16.mxu0 %v3121_v14  ;;  %v3206_v14 = vld [vmem:[#allocation2 + $0x5a8] ss:$16 sps:$4 sm:$0xff]  }
  0xa6   :  { %1517 = vmatpush1.bf16.msra.mxu1 %v3116_v13  ;;  %v3203_v13 = vld [vmem:[#allocation2 + $0x5c0] ss:$16 sps:$4 sm:$0xff]  }
  0xa7   :  { %1518 = vmatprep.subr.bf16.mxu1 %v3124_v15  ;;  %1357 = vmatmul.mubr.bf16.vlgmr.msra.gmra.mrb[0].mxu0 %v76_v16  ;;  %v3211_v15 = vld [vmem:[#allocation2 + $0x5e4] ss:$16 sps:$4 sm:$0xff]  }
  0xa8   :  { %1366 = vmatpush1.bf16.msra.mxu0 %v3119_v17  ;;  %1397 = vmatprep.mubr.bf16.mxu0 %v79_v22  ;;  %v3209_v17 = vld [vmem:[#allocation2 + $0x5e0] ss:$16 sps:$4 sm:$0xff]  }
  0xa9   :  { %1367 = vmatprep.subr.bf16.mxu0 %v3127_v19  ;;  %v3212_v19 = vld [vmem:[#allocation2 + $0x5c8] ss:$16 sps:$4 sm:$0xff]  }
  0xaa   :  { %1519 = vmatpush1.bf16.msra.mxu1 %v3122_v18  ;;  %v71_v18 = vld [vmem:[%s3677_s0 + $0x20] sm:$0xff] }
  0xab   :  { %1529 = vmatprep.subr.bf16.mxu1 %v3130_v21  ;;  %v3217_v21 = vld [vmem:[#allocation2 + $0x5ec] ss:$16 sps:$4 sm:$0xff]  }
  0xac   :  { %1368 = vmatpush1.bf16.msra.mxu0 %v3125_v23  ;;  %v3221_v23 = vld [vmem:[#allocation4] ss:$8 sps:$4 sm:$0xff]  }
  0xad   :  { %1521 = vmatmul.mubr.bf16.vlgmr.msra.gmra.mrb[4].mxu1 %v76_v16  ;;  %1369 = vmatprep.subr.bf16.mxu0 %v3133_v25  ;;  %v3214_v16 = vld [vmem:[#allocation2 + $0x5cc] ss:$16 sps:$4 sm:$0xff]  }
  0xae   :  { %1530 = vmatpush1.bf16.msra.mxu1 %v3128_v24  ;;  %1561 = vmatprep.mubr.bf16.mxu1 %v79_v22  ;;  %v78_v22 = vpack.c.bf16 %v71_v18, %v71_v18  ;;  %v3215_v24 = vld [vmem:[#allocation2 + $0x5e8] ss:$16 sps:$4 sm:$0xff]   ;;  %v3226_v25 = vld [vmem:[#allocation4 + $0x14] ss:$8 sps:$4 sm:$0xff]  }
  0xaf   :  { %1531 = vmatprep.subr.bf16.mxu1 %v3136_v26  ;;  %v3220_v26 = vld [vmem:[#allocation2 + $0x60c] ss:$16 sps:$4 sm:$0xff]  }
  0xb0   :  { %1370 = vmatpush1.bf16.msra.mxu0 %v3131_v27  ;;  %v3224_v27 = vld [vmem:[#allocation4 + $0x10] ss:$8 sps:$4 sm:$0xff]  }
  0xb1   :  { %1371 = vmatprep.subr.bf16.mxu0 %v3139_v29  ;;  %v3229_v29 = vld [vmem:[#allocation4 + $0x24] ss:$8 sps:$4 sm:$0xff]  }
  0xb2   :  { %1532 = vmatpush1.bf16.msra.mxu1 %v3134_v28  ;;  %v3218_v28 = vld [vmem:[#allocation2 + $0x608] ss:$16 sps:$4 sm:$0xff]  }
  0xb3   :  { %1533 = vmatprep.subr.bf16.mxu1 %v3142_v30  ;;  %v3227_v30 = vld [vmem:[#allocation4 + $0x20] ss:$8 sps:$4 sm:$0xff]  }
  0xb4   :  { %1372 = vmatpush1.bf16.msra.mxu0 %v3137_v31  ;;  %v3232_v31 = vld [vmem:[#allocation4 + $0x34] ss:$8 sps:$4 sm:$0xff]  }
  0xb5   :  { %1373 = vmatprep.subr.bf16.mxu0 %v3145_v33  ;;  %v3235_v33 = vld [vmem:[#allocation4 + $0x44] ss:$8 sps:$4 sm:$0xff]  }
  0xb6   :  { %1534 = vmatpush1.bf16.msra.mxu1 %v3140_v32  ;;  %v3230_v32 = vld [vmem:[#allocation4 + $0x30] ss:$8 sps:$4 sm:$0xff]  }
  0xb7   :  { %1535 = vmatprep.subr.bf16.mxu1 %v3148_v34  ;;  %v3233_v34 = vld [vmem:[#allocation4 + $0x40] ss:$8 sps:$4 sm:$0xff]  }
  0xb8   :  { %1374 = vmatpush1.bf16.msra.mxu0 %v3143_v35  ;;  %v3238_v35 = vld [vmem:[#allocation4 + $0x54] ss:$8 sps:$4 sm:$0xff]  }
  0xb9   :  { %1375 = vmatprep.subr.bf16.mxu0 %v3151_v37  ;;  %v3241_v37 = vld [vmem:[#allocation4 + $0x64] ss:$8 sps:$4 sm:$0xff]  }
  0xba   :  { %1536 = vmatpush1.bf16.msra.mxu1 %v3146_v36  ;;  %v3236_v36 = vld [vmem:[#allocation4 + $0x50] ss:$8 sps:$4 sm:$0xff]  }
  0xbb   :  { %1537 = vmatprep.subr.bf16.mxu1 %v3154_v38  ;;  %v3239_v38 = vld [vmem:[#allocation4 + $0x60] ss:$8 sps:$4 sm:$0xff]  }
  0xbc   :  { %1376 = vmatpush1.bf16.msra.mxu0 %v3149_v39 }
  0xbd   :  { %1377 = vmatprep.subr.bf16.mxu0 %v3157_v41  ;;  %v3242_v41 = vld [vmem:[#allocation4 + $0x70] ss:$8 sps:$4 sm:$0xff]  }
  0xbe   :  { %1538 = vmatpush1.bf16.msra.mxu1 %v3152_v40 }
  0xbf   :  { %1539 = vmatprep.subr.bf16.mxu1 %v3160_v42 }
  0xc0   :  { %1378 = vmatpush1.bf16.msra.mxu0 %v3155_v43  ;;  %v3247_v43 = vld [vmem:[#allocation4 + $0x84] ss:$8 sps:$4 sm:$0xff]  }
  0xc1   :  { %1379 = vmatprep.subr.bf16.mxu0 %v3163_v45  ;;  %v3250_v45 = vld [vmem:[#allocation4 + $0x94] ss:$8 sps:$4 sm:$0xff]  }
  0xc2   :  { %1540 = vmatpush1.bf16.msra.mxu1 %v3158_v44 }
  0xc3   :  { %1541 = vmatprep.subr.bf16.mxu1 %v3166_v46  ;;  %v3248_v46 = vld [vmem:[#allocation4 + $0x90] ss:$8 sps:$4 sm:$0xff]  }
  0xc4   :  { %1380 = vmatpush1.bf16.msra.mxu0 %v3161_v47  ;;  %v3253_v47 = vld [vmem:[#allocation4 + $0xa4] ss:$8 sps:$4 sm:$0xff]  }
  0xc5   :  { %1381 = vmatprep.subr.bf16.mxu0 %v3169_v49  ;;  %v3256_v49 = vld [vmem:[#allocation4 + $0xb4] ss:$8 sps:$4 sm:$0xff]  }
  0xc6   :  { %1542 = vmatpush1.bf16.msra.mxu1 %v3164_v48  ;;  %v3251_v48 = vld [vmem:[#allocation4 + $0xa0] ss:$8 sps:$4 sm:$0xff]  }
  0xc7   :  { %1543 = vmatprep.subr.bf16.mxu1 %v3172_v50  ;;  %v3254_v50 = vld [vmem:[#allocation4 + $0xb0] ss:$8 sps:$4 sm:$0xff]  }
  0xc8   :  { %1382 = vmatpush1.bf16.msra.mxu0 %v3167_v51  ;;  %v3259_v51 = vld [vmem:[#allocation4 + $0xc4] ss:$8 sps:$4 sm:$0xff]  }
  0xc9   :  { %1383 = vmatprep.subr.bf16.mxu0 %v3175_v53  ;;  %v3262_v53 = vld [vmem:[#allocation4 + $0xd4] ss:$8 sps:$4 sm:$0xff]  }
  0xca   :  { %1544 = vmatpush1.bf16.msra.mxu1 %v3170_v52  ;;  %v3257_v52 = vld [vmem:[#allocation4 + $0xc0] ss:$8 sps:$4 sm:$0xff]  }
  0xcb   :  { %1545 = vmatprep.subr.bf16.mxu1 %v3178_v54  ;;  %v3260_v54 = vld [vmem:[#allocation4 + $0xd0] ss:$8 sps:$4 sm:$0xff]  }
  0xcc   :  { %1384 = vmatpush1.bf16.msra.mxu0 %v3173_v55  ;;  %v3265_v55 = vld [vmem:[#allocation4 + $0xe4] ss:$8 sps:$4 sm:$0xff]  }
  0xcd   :  { %1385 = vmatprep.subr.bf16.mxu0 %v3181_v57  ;;  %v3268_v57 = vld [vmem:[#allocation4 + $0xf4] ss:$8 sps:$4 sm:$0xff]  }
  0xce   :  { %1546 = vmatpush1.bf16.msra.mxu1 %v3176_v56  ;;  %v3263_v56 = vld [vmem:[#allocation4 + $0xe0] ss:$8 sps:$4 sm:$0xff]  }
  0xcf   :  { %1547 = vmatprep.subr.bf16.mxu1 %v3184_v58  ;;  %v3266_v58 = vld [vmem:[#allocation4 + $0xf0] ss:$8 sps:$4 sm:$0xff]  }
  0xd0   :  { %1386 = vmatpush1.bf16.msra.mxu0 %v3179_v59  ;;  %v3271_v59 = vld [vmem:[#allocation4 + $0x104] ss:$8 sps:$4 sm:$0xff]  }
  0xd1   :  { %1387 = vmatprep.subr.bf16.mxu0 %v3187_v61  ;;  %v3318_v61 = vld [vmem:[%s3682_s5] sm:$0xff]  }
  0xd2   :  { %1548 = vmatpush1.bf16.msra.mxu1 %v3182_v60  ;;  %v3317_v60 = vld [vmem:[%s3682_s5 + $0x40] sm:$0xff]  }
  0xd3   :  { %1549 = vmatprep.subr.bf16.mxu1 %v3190_v62  ;;  %v3319_v62 = vld [vmem:[%s3682_s5 + $0x48] sm:$0xff]  }
  0xd4   :  { %1388 = vmatpush1.bf16.msra.mxu0 %v3185_v63  ;;  %v3320_v63 = vld [vmem:[%s3682_s5 + $0x8] sm:$0xff]  }
  0xd5   :  { %1389 = vmatprep.subr.bf16.mxu0 %v3193_v2  ;;  %v3322_v2 = vld [vmem:[%s3682_s5 + $0x10] sm:$0xff]  }
  0xd6   :  { %1550 = vmatpush1.bf16.msra.mxu1 %v3188_v1  ;;  %v3321_v1 = vld [vmem:[%s3682_s5 + $0x50] sm:$0xff]  }
  0xd7   :  { %1551 = vmatprep.subr.bf16.mxu1 %v3196_v3  ;;  %v3323_v3 = vld [vmem:[%s3682_s5 + $0x58] sm:$0xff]  }
  0xd8   :  { %1390 = vmatpush1.bf16.msra.mxu0 %v3191_v4  ;;  %v3324_v4 = vld [vmem:[%s3682_s5 + $0x18] sm:$0xff]  }
  0xd9   :  { %1391 = vmatprep.subr.bf16.mxu0 %v3199_v6  ;;  %v3326_v6 = vld [vmem:[%s3682_s5 + $0x20] sm:$0xff]  }
  0xda   :  { %1552 = vmatpush1.bf16.msra.mxu1 %v3194_v5  ;;  %v3325_v5 = vld [vmem:[%s3682_s5 + $0x60] sm:$0xff]  }
  0xdb   :  { %1553 = vmatprep.subr.bf16.mxu1 %v3202_v7  ;;  %v3327_v7 = vld [vmem:[%s3682_s5 + $0x68] sm:$0xff]  }
  0xdc   :  { %1392 = vmatpush1.bf16.msra.mxu0 %v3197_v8  ;;  %v3328_v8 = vld [vmem:[%s3682_s5 + $0x28] sm:$0xff]  }
  0xdd   :  { %1393 = vmatprep.subr.bf16.mxu0 %v3205_v11 }
  0xde   :  { %1554 = vmatpush1.bf16.msra.mxu1 %v3200_v9  ;;  %v279_v9 = vlaneseq }
  0xdf   :  { %1555 = vmatprep.subr.bf16.mxu1 %v3208_v12 }
  0xe0   :  { %1394 = vmatpush1.bf16.msra.mxu0 %v3203_v13  ;;  %v3559_v11 = vshrl.u32 %v279_v9, 7  ;;  %v3565_v13 = vld [vmem:[%s3679_s2] sm:$0xf]  ;;  %v3329_v9 = vld [vmem:[%s3682_s5 + $0x70] sm:$0xff]  }
  0xe1   :  { %1395 = vmatprep.subr.bf16.mxu0 %v3211_v15 }
  0xe2   :  { %1556 = vmatpush1.bf16.msra.mxu1 %v3206_v14  ;;  %v281_v12 = vsub.s32 0, %v3559_v11  ;;  %v285_v14 = vsub.s32 1, %v3559_v11 }
  0xe3   :  { %1557 = vmatprep.subr.bf16.mxu1 %v3214_v16 }
  0xe4   :  { %1396 = vmatpush1.bf16.msra.mxu0 %v3209_v17  ;;  %v282_v15 = vrot.slane %v3565_v13, %v281_v12  ;;  %v286_v16 = vrot.slane %v3565_v13, %v285_v14 }
  0xe5   :  { %2015 = vmatprep.subr.bf16.mxu0 %v3223_v20 }
  0xe6   :  { %1558 = vmatpush1.bf16.msra.mxu1 %v3212_v19 }
  0xe7   :  { %1559 = vmatprep.subr.bf16.mxu1 %v3217_v21  ;;  %1398 = vmatmul.mubr.bf16.vlgmr.msra.gmra.mrb[0].mxu0 %v78_v22 }
  0xe8   :  { %2016 = vmatpush1.bf16.msra.mxu0 %v3221_v23 }
  0xe9   :  { %2017 = vmatprep.subr.bf16.mxu0 %v3226_v25 }
  0xea   :  { %1560 = vmatpush1.bf16.msra.mxu1 %v3215_v24 }
  0xeb   :  { %1570 = vmatprep.subr.bf16.mxu1 %v3220_v26 }
  0xec   :  { %2018 = vmatpush1.bf16.msra.mxu0 %v3224_v27 }
  0xed   :  { %1562 = vmatmul.mubr.bf16.vlgmr.msra.gmra.mrb[4].mxu1 %v78_v22  ;;  %2019 = vmatprep.subr.bf16.mxu0 %v3229_v29 }
  0xee   :  { %1571 = vmatpush1.bf16.msra.mxu1 %v3218_v28  ;;  %1602 = vmatprep.mubr.bf16.mxu1 %v3403_v0  ;;  %v3244_v0 = vld [vmem:[#allocation4 + $0x74] ss:$8 sps:$4 sm:$0xff]   ;;  %v3269_v28 = vld [vmem:[#allocation4 + $0x100] ss:$8 sps:$4 sm:$0xff]  }
  0xef   :  { %2806 = vmatprep.subr.bf16.mxu1 %v3317_v60  ;;  %v3305_v60 = vld [vmem:[#allocation4 + $0x1c0] ss:$8 sps:$4 sm:$0xff]  }
  0xf0   :  { %2020 = vmatpush1.bf16.msra.mxu0 %v3227_v30  ;;  %v3274_v30 = vld [vmem:[#allocation4 + $0x114] ss:$8 sps:$4 sm:$0xff]  }
  0xf1   :  { %2021 = vmatprep.subr.bf16.mxu0 %v3232_v31  ;;  %v293_v31 = vsub.s32 3, %v3559_v11 }
  0xf4   :  { %2022 = vmatpush1.bf16.msra.mxu0 %v3230_v32  ;;  %v3272_v32 = vld [vmem:[#allocation4 + $0x110] ss:$8 sps:$4 sm:$0xff]  }
  0xf5   :  { %2023 = vmatprep.subr.bf16.mxu0 %v3235_v33  ;;  %v3277_v33 = vld [vmem:[#allocation4 + $0x124] ss:$8 sps:$4 sm:$0xff]  }
  0xf8   :  { %2024 = vmatpush1.bf16.msra.mxu0 %v3233_v34  ;;  %v294_v34 = vrot.slane %v3565_v13, %v293_v31 }
  0xf9   :  { %2706 = vmatmul.mubr.msk.bf16.vlgmr.msra.gmra.mrb[4].mxu1 %vm1279_vm0, %v3494_v10  ;;  %2025 = vmatprep.subr.bf16.mxu0 %v3238_v35  ;;  %v3245_v10 = vld [vmem:[#allocation4 + $0x80] ss:$8 sps:$4 sm:$0xff]  }
  0xfa   :  { %2807 = vmatpush3.bf16.msra.mxu1 %v3318_v61  ;;  %v3275_v35 = vld [vmem:[#allocation4 + $0x120] ss:$8 sps:$4 sm:$0xff]   ;;  %v289_v61 = vsub.s32 2, %v3559_v11 }
  0xfb   :  { %2808 = vmatprep.subr.bf16.mxu1 %v3319_v62  ;;  %v3310_v62 = vld [vmem:[#allocation4 + $0x1d4] ss:$8 sps:$4 sm:$0xff]   ;;  %v3334_v11 = vld [vmem:[%s3684_s7 + $0x8] sm:$0xff]  }
  0xfc   :  { %2026 = vmatpush1.bf16.msra.mxu0 %v3236_v36 }
  0xfd   :  { %2027 = vmatprep.subr.bf16.mxu0 %v3241_v37  ;;  %v3280_v37 = vld [vmem:[#allocation4 + $0x134] ss:$8 sps:$4 sm:$0xff]  }
  0xfe   :  { %2809 = vmatpush3.bf16.msra.mxu1 %v3320_v63  ;;  %v3308_v63 = vld [vmem:[#allocation4 + $0x1d0] ss:$8 sps:$4 sm:$0xff]  }
  0xff   :  { %2810 = vmatprep.subr.bf16.mxu1 %v3321_v1  ;;  %v290_v1 = vrot.slane %v3565_v13, %v289_v61  ;;  %v3330_v13 = vld [vmem:[%s3682_s5 + $0x30] sm:$0xff]  }
 0x100   :  { %v3519_v39 = vpop.f32.mrb[0].mxu1  ;;  %2028 = vmatpush1.bf16.msra.mxu0 %v3239_v38 }
 0x101   :  { %v3521_v40 = vpop.f32.mrb[1].mxu1  ;;  %2029 = vmatprep.subr.bf16.mxu0 %v3244_v0 }
 0x102   :  { %v1444_v42 = vpop.f32.mrb[2].mxu1  ;;  %2811 = vmatpush3.bf16.msra.mxu1 %v3322_v2  ;;  %v3313_v2 = vld [vmem:[#allocation4 + $0x1e4] ss:$8 sps:$4 sm:$0xff]  }
 0x103   :  { %v1445_v44 = vpop.f32.mrb[3].mxu1  ;;  %2812 = vmatprep.subr.bf16.mxu1 %v3323_v3  ;;  %v3311_v3 = vld [vmem:[#allocation4 + $0x1e0] ss:$8 sps:$4 sm:$0xff]  }
 0x104   :  { %2030 = vmatpush1.bf16.msra.mxu0 %v3242_v41  ;;  %v3278_v41 = vld [vmem:[#allocation4 + $0x130] ss:$8 sps:$4 sm:$0xff]  }
 0x105   :  { %2031 = vmatprep.subr.bf16.mxu0 %v3247_v43  ;;  %v3283_v43 = vld [vmem:[#allocation4 + $0x144] ss:$8 sps:$4 sm:$0xff]  }
 0x106   :  { %2813 = vmatpush3.bf16.msra.mxu1 %v3324_v4 }
 0x107   :  { %2814 = vmatprep.subr.bf16.mxu1 %v3325_v5  ;;  %v3316_v5 = vld [vmem:[#allocation4 + $0x1f4] ss:$8 sps:$4 sm:$0xff]  }
 0x108   :  { %2032 = vmatpush1.bf16.msra.mxu0 %v3245_v10  ;;  %v3281_v10 = vld [vmem:[#allocation4 + $0x140] ss:$8 sps:$4 sm:$0xff]  }
 0x109   :  { %2033 = vmatprep.subr.bf16.mxu0 %v3250_v45  ;;  %v3286_v45 = vld [vmem:[#allocation4 + $0x154] ss:$8 sps:$4 sm:$0xff]  }
 0x10a   :  { %2815 = vmatpush3.bf16.msra.mxu1 %v3326_v6  ;;  %v3314_v6 = vld [vmem:[#allocation4 + $0x1f0] ss:$8 sps:$4 sm:$0xff]  }
 0x10b   :  { %2816 = vmatprep.subr.bf16.mxu1 %v3327_v7 }
 0x10c   :  { %2034 = vmatpush1.bf16.msra.mxu0 %v3248_v46  ;;  %v3284_v46 = vld [vmem:[#allocation4 + $0x150] ss:$8 sps:$4 sm:$0xff]  }
 0x10d   :  { %2035 = vmatprep.subr.bf16.mxu0 %v3253_v47  ;;  %v3289_v47 = vld [vmem:[#allocation4 + $0x164] ss:$8 sps:$4 sm:$0xff]  }
 0x10e   :  { %2817 = vmatpush3.bf16.msra.mxu1 %v3328_v8 }
 0x10f   :  { %2818 = vmatprep.subr.bf16.mxu1 %v3329_v9 }
 0x110   :  { %2036 = vmatpush1.bf16.msra.mxu0 %v3251_v48  ;;  %v3287_v48 = vld [vmem:[#allocation4 + $0x160] ss:$8 sps:$4 sm:$0xff]  }
 0x111   :  { %2037 = vmatprep.subr.bf16.mxu0 %v3256_v49  ;;  %v3292_v49 = vld [vmem:[#allocation4 + $0x174] ss:$8 sps:$4 sm:$0xff]  }
 0x112   :  { %2819 = vmatpush3.bf16.msra.mxu1 %v3330_v13 }
 0x114   :  { %2038 = vmatpush1.bf16.msra.mxu0 %v3254_v50  ;;  %v3290_v50 = vld [vmem:[#allocation4 + $0x170] ss:$8 sps:$4 sm:$0xff]  }
 0x115   :  { %2039 = vmatprep.subr.bf16.mxu0 %v3259_v51  ;;  %v3295_v51 = vld [vmem:[#allocation4 + $0x184] ss:$8 sps:$4 sm:$0xff]  }
 0x118   :  { %2040 = vmatpush1.bf16.msra.mxu0 %v3257_v52  ;;  %v3293_v52 = vld [vmem:[#allocation4 + $0x180] ss:$8 sps:$4 sm:$0xff]  }
 0x119   :  { %2041 = vmatprep.subr.bf16.mxu0 %v3262_v53  ;;  %v3298_v53 = vld [vmem:[#allocation4 + $0x194] ss:$8 sps:$4 sm:$0xff]  }
 0x11c   :  { %2042 = vmatpush1.bf16.msra.mxu0 %v3260_v54  ;;  %v3296_v54 = vld [vmem:[#allocation4 + $0x190] ss:$8 sps:$4 sm:$0xff]  }
 0x11d   :  { %2043 = vmatprep.subr.bf16.mxu0 %v3265_v55  ;;  %v3301_v55 = vld [vmem:[#allocation4 + $0x1a4] ss:$8 sps:$4 sm:$0xff]  }
 0x120   :  { %2044 = vmatpush1.bf16.msra.mxu0 %v3263_v56  ;;  %v3299_v56 = vld [vmem:[#allocation4 + $0x1a0] ss:$8 sps:$4 sm:$0xff]  }
 0x121   :  { %2045 = vmatprep.subr.bf16.mxu0 %v3268_v57  ;;  %v3304_v57 = vld [vmem:[#allocation4 + $0x1b4] ss:$8 sps:$4 sm:$0xff]  }
 0x124   :  { %2046 = vmatpush1.bf16.msra.mxu0 %v3266_v58  ;;  %v3302_v58 = vld [vmem:[#allocation4 + $0x1b0] ss:$8 sps:$4 sm:$0xff]  }
 0x125   :  { %2056 = vmatprep.subr.bf16.mxu0 %v3271_v59  ;;  %v3307_v59 = vld [vmem:[#allocation4 + $0x1c4] ss:$8 sps:$4 sm:$0xff]  }
 0x1ba   :  { %v1399_v17 = vpop.f32.mrb[0].mxu0 }
 0x1bb   :  { %v2886_v18 = vadd.f32 %v1399_v17, %v282_v15  ;;  %v1401_v19 = vpop.f32.mrb[1].mxu0  ;;  %v3331_v15 = vld [vmem:[%s3682_s5 + $0x78] sm:$0xff]   ;;  %v3404_v17 = vmov 0.0  }
 0x1bc   :  { %v2888_v20 = vadd.f32 %v1401_v19, %v286_v16  ;;  %v1403_v21 = vpop.f32.mrb[2].mxu0  ;;  %v3332_v16 = vld [vmem:[%s3682_s5 + $0x38] sm:$0xff]   ;;  %2820 = vmatprep.subr.bf16.mxu1 %v3331_v15 }
 0x1bd   :  { %v2887_v22 = vadd.f32 %v2886_v18, %v3519_v39  ;;  %v1404_v23 = vpop.f32.mrb[3].mxu0  ;;  %2821 = vmatpush3.bf16.msra.mxu1 %v3332_v16  ;;  %v1683_v18 = vld [vmem:[%s3681_s4] sm:$0x3] }
 0x1be   :  { %v2889_v24 = vadd.f32 %v2888_v20, %v3521_v40  ;;  %2846 = vmatprep.subr.bf16.mxu1 %v3404_v17  ;;  %v1688_v19 = vrot.slane %v1683_v18, %v281_v12  ;;  %v1692_v20 = vrot.slane %v1683_v18, %v285_v14  ;;  %v3335_v12 = vld [vmem:[%s3684_s7 + $0x10] sm:$0xff]   ;;  %v3336_v14 = vld [vmem:[%s3684_s7 + $0x18] sm:$0xff]  }
 0x1bf   :  { %v1611_v25 = vmax.f32 %v2887_v22, 0.0 }
 0x1c0   :  { %v1612_v26 = vmax.f32 %v2889_v24, 0.0 }
 0x1c1   :  { %v1615_v29 = vpack.c.bf16 %v1611_v25, %v1611_v25 }
 0x1c2   :  { %v1616_v27 = vpack.c.bf16 %v1612_v26, %v1612_v26 }
 0x1c4   :  { %2047 = vmatprep.mubr.bf16.mxu0 %v1616_v27 }
 0x1c5   :  { %2048 = vmatmul.mubr.bf16.vlgmr.msra.gmra.mrb[4].mxu0 %v1615_v29 }
 0x1c6   :  { %2057 = vmatpush1.bf16.msra.mxu0 %v3269_v28 }
 0x1c7   :  { %2058 = vmatprep.subr.bf16.mxu0 %v3274_v30  ;;  %v3333_v30 = vld [vmem:[%s3684_s7] sm:$0xff]  }
 0x1ca   :  { %2059 = vmatpush1.bf16.msra.mxu0 %v3272_v32  ;;  %v3337_v32 = vld [vmem:[%s3684_s7 + $0x20] sm:$0xff]  }
 0x1cb   :  { %2060 = vmatprep.subr.bf16.mxu0 %v3277_v33  ;;  %v3338_v33 = vld [vmem:[%s3684_s7 + $0x28] sm:$0xff]  }
 0x1cc   :  { %v1604_v36 = vpop.f32.mrb[4].mxu1 }
 0x1cd   :  { %v1606_v38 = vpop.f32.mrb[5].mxu1  ;;  %v2890_v4 = vadd.f32 %v1604_v36, %v290_v1 }
 0x1ce   :  { %v2891_v0 = vadd.f32 %v1606_v38, %v294_v34  ;;  %v1608_v39 = vpop.f32.mrb[6].mxu1  ;;  %2061 = vmatpush1.bf16.msra.mxu0 %v3275_v35  ;;  %v3339_v34 = vld [vmem:[%s3684_s7 + $0x30] sm:$0xff]   ;;  %v3340_v35 = vld [vmem:[%s3684_s7 + $0x38] sm:$0xff]  }
 0x1cf   :  { %v1609_v40 = vpop.f32.mrb[7].mxu1  ;;  %2062 = vmatprep.subr.bf16.mxu0 %v3280_v37  ;;  %v1613_v7 = vmax.f32 %v2890_v4, 0.0  ;;  %v2771_v37 = vld [vmem:[%s3683_s6] ss:$0 sm:$0xff] }
 0x1d0   :  { %v1614_v42 = vmax.f32 %v2891_v0, 0.0 }
 0x1d1   :  { %v1617_v8 = vpack.c.bf16 %v1613_v7, %v1613_v7 }
 0x1d2   :  { %v1618_v44 = vpack.c.bf16 %v1614_v42, %v1614_v42  ;;  %2063 = vmatpush1.bf16.msra.mxu0 %v3278_v41 }
 0x1d3   :  { %2064 = vmatprep.subr.bf16.mxu0 %v3283_v43  ;;  %v3341_v43 = vld [vmem:[%s3686_s9] sm:$0xff]  }
 0x1d4   :  { %2088 = vmatprep.mubr.bf16.mxu0 %v1618_v44 }
 0x1d6   :  { %2065 = vmatpush1.bf16.msra.mxu0 %v3281_v10  ;;  %v3342_v10 = vld [vmem:[%s3686_s9 + $0x8] sm:$0xff]  }
 0x1d7   :  { %2066 = vmatprep.subr.bf16.mxu0 %v3286_v45  ;;  %v3343_v45 = vld [vmem:[%s3686_s9 + $0x10] sm:$0xff]  }
 0x1da   :  { %2067 = vmatpush1.bf16.msra.mxu0 %v3284_v46  ;;  %v3344_v46 = vld [vmem:[%s3686_s9 + $0x18] sm:$0xff]  }
 0x1db   :  { %2068 = vmatprep.subr.bf16.mxu0 %v3289_v47  ;;  %v3345_v47 = vld [vmem:[%s3686_s9 + $0x20] sm:$0xff]  }
 0x1de   :  { %2069 = vmatpush1.bf16.msra.mxu0 %v3287_v48  ;;  %v3346_v48 = vld [vmem:[%s3686_s9 + $0x28] sm:$0xff]  }
 0x1df   :  { %2070 = vmatprep.subr.bf16.mxu0 %v3292_v49  ;;  %v3347_v49 = vld [vmem:[%s3686_s9 + $0x30] sm:$0xff]  }
 0x1e2   :  { %2071 = vmatpush1.bf16.msra.mxu0 %v3290_v50  ;;  %v3348_v50 = vld [vmem:[%s3686_s9 + $0x38] sm:$0xff]  }
 0x1e3   :  { %2072 = vmatprep.subr.bf16.mxu0 %v3295_v51  ;;  %v2788_v51 = vld [vmem:[%s3685_s8] ss:$0 sm:$0xff] }
 0x1e6   :  { %2073 = vmatpush1.bf16.msra.mxu0 %v3293_v52 }
 0x1e7   :  { %2074 = vmatprep.subr.bf16.mxu0 %v3298_v53 }
 0x1ea   :  { %2075 = vmatpush1.bf16.msra.mxu0 %v3296_v54 }
 0x1eb   :  { %2076 = vmatprep.subr.bf16.mxu0 %v3301_v55 }
 0x1ee   :  { %2077 = vmatpush1.bf16.msra.mxu0 %v3299_v56 }
 0x1ef   :  { %2078 = vmatprep.subr.bf16.mxu0 %v3304_v57 }
 0x1f2   :  { %2079 = vmatpush1.bf16.msra.mxu0 %v3302_v58 }
 0x1f3   :  { %2080 = vmatprep.subr.bf16.mxu0 %v3307_v59  ;;  %v2797_v59 = vld [vmem:[%s3687_s10] ss:$0 sm:$0xff] }
 0x1f6   :  { %2081 = vmatpush1.bf16.msra.mxu0 %v3305_v60 }
 0x1f7   :  { %2082 = vmatprep.subr.bf16.mxu0 %v3310_v62 }
 0x1fa   :  { %2083 = vmatpush1.bf16.msra.mxu0 %v3308_v63 }
 0x1fb   :  { %2084 = vmatprep.subr.bf16.mxu0 %v3313_v2 }
 0x1fe   :  { %2085 = vmatpush1.bf16.msra.mxu0 %v3311_v3 }
 0x1ff   :  { %2086 = vmatprep.subr.bf16.mxu0 %v3316_v5 }
 0x202   :  { %2087 = vmatpush1.bf16.msra.mxu0 %v3314_v6 }
 0x205   :  { %2089 = vmatmul.mubr.bf16.vlgmr.msra.gmra.mrb[4].mxu0 %v1617_v8 }
 0x2d8   :  { %v2090_v21 = vpop.f32.mrb[4].mxu0 }
 0x2d9   :  { %v2892_v22 = vadd.f32 %v2090_v21, %v1688_v19  ;;  %v2092_v23 = vpop.f32.mrb[5].mxu0 }
 0x2da   :  { %v2893_v24 = vadd.f32 %v2092_v23, %v1692_v20  ;;  %v2094_v25 = vpop.f32.mrb[6].mxu0 }
 0x2db   :  { %v2097_v26 = vmax.f32 %v2892_v22, 0.0  ;;  %v2095_v27 = vpop.f32.mrb[7].mxu0 }
 0x2dc   :  { %v2098_v28 = vmax.f32 %v2893_v24, 0.0 }
 0x2dd   :  { %v2099_v31 = vpack.c.bf16 %v2097_v26, %v2097_v26 }
 0x2de   :  { %v2100_v29 = vpack.c.bf16 %v2098_v28, %v2098_v28 }
 0x2e0   :  { %2268 = vmatprep.mubr.bf16.mxu1 %v2100_v29 }
 0x2e1   :  { %2269 = vmatmul.mubr.bf16.vlgmr.msra.gmra.mrb[8].mxu1 %v2099_v31 }
 0x2e2   :  { %2847 = vmatpush3.bf16.msra.mxu1 %v3333_v30  ;;  %2862 = vmatprep.mubr.msk.bf16.mxu1 %vm3405_vm1, %v3404_v17 }
 0x2e3   :  { %2848 = vmatprep.subr.bf16.mxu1 %v3404_v17 }
 0x2e6   :  { %2849 = vmatpush3.bf16.msra.mxu1 %v3334_v11 }
 0x2e7   :  { %2850 = vmatprep.subr.bf16.mxu1 %v3404_v17 }
 0x2ea   :  { %2851 = vmatpush3.bf16.msra.mxu1 %v3335_v12 }
 0x2eb   :  { %2852 = vmatprep.subr.bf16.mxu1 %v3404_v17 }
 0x2ee   :  { %2853 = vmatpush3.bf16.msra.mxu1 %v3336_v14 }
 0x2ef   :  { %2854 = vmatprep.subr.bf16.mxu1 %v3404_v17 }
 0x2f2   :  { %2855 = vmatpush3.bf16.msra.mxu1 %v3337_v32 }
 0x2f3   :  { %2856 = vmatprep.subr.bf16.mxu1 %v3404_v17 }
 0x2f6   :  { %2857 = vmatpush3.bf16.msra.mxu1 %v3338_v33 }
 0x2f7   :  { %2858 = vmatprep.subr.bf16.mxu1 %v3404_v17 }
 0x2fa   :  { %2859 = vmatpush3.bf16.msra.mxu1 %v3339_v34 }
 0x2fb   :  { %2860 = vmatprep.subr.bf16.mxu1 %v3404_v17 }
 0x2fe   :  { %2861 = vmatpush3.bf16.msra.mxu1 %v3340_v35 }
 0x2ff   :  { %2866 = vmatprep.subr.bf16.mxu1 %v3404_v17 }
 0x3b4   :  { %v2822_v36 = vpop.f32.mrb[8].mxu1 }
 0x3b5   :  { %v2823_v38 = vpop.f32.mrb[9].mxu1 }
 0x3b6   :  { %v2824_v0 = vadd.f32 %v2823_v38, %v2822_v36  ;;  %v2825_v39 = vpop.f32.mrb[10].mxu1 }
 0x3b7   :  { %v2826_v40 = vpop.f32.mrb[11].mxu1 }
 0x3b8   :  { %v2271_v41 = vadd.f32 %v2824_v0, %v2771_v37 }
 0x3ba   :  { %v2276_v42 = vmax.f32 %v2271_v41, 0.0 }
 0x3bc   :  { %v2277_v44 = vpack.c.bf16 %v2276_v42, %v2276_v42 }
 0x3be   :  { %2863 = vmatmul.mubr.bf16.vlgmr.msra.gmra.mrb[12].mxu1 %v2277_v44 }
 0x3bf   :  { %2867 = vmatpush3.bf16.msra.mxu1 %v3341_v43  ;;  %2882 = vmatprep.mubr.msk.bf16.mxu1 %vm3405_vm1, %v3404_v17 }
 0x3c0   :  { %2868 = vmatprep.subr.bf16.mxu1 %v3404_v17 }
 0x3c3   :  { %2869 = vmatpush3.bf16.msra.mxu1 %v3342_v10 }
 0x3c4   :  { %2870 = vmatprep.subr.bf16.mxu1 %v3404_v17 }
 0x3c7   :  { %2871 = vmatpush3.bf16.msra.mxu1 %v3343_v45 }
 0x3c8   :  { %2872 = vmatprep.subr.bf16.mxu1 %v3404_v17 }
 0x3cb   :  { %2873 = vmatpush3.bf16.msra.mxu1 %v3344_v46 }
 0x3cc   :  { %2874 = vmatprep.subr.bf16.mxu1 %v3404_v17 }
 0x3cf   :  { %2875 = vmatpush3.bf16.msra.mxu1 %v3345_v47 }
 0x3d0   :  { %2876 = vmatprep.subr.bf16.mxu1 %v3404_v17 }
 0x3d3   :  { %2877 = vmatpush3.bf16.msra.mxu1 %v3346_v48 }
 0x3d4   :  { %2878 = vmatprep.subr.bf16.mxu1 %v3404_v17 }
 0x3d7   :  { %2879 = vmatpush3.bf16.msra.mxu1 %v3347_v49 }
 0x3d8   :  { %2880 = vmatprep.subr.bf16.mxu1 %v3404_v17 }
 0x3db   :  { %2881 = vmatpush3.bf16.msra.mxu1 %v3348_v50 }
 0x491   :  { %v2383_v52 = vpop.f32.mrb[12].mxu1 }
 0x492   :  { %v2384_v53 = vadd.f32 %v2788_v51, %v2383_v52  ;;  %v2864_v54 = vpop.f32.mrb[13].mxu1 }
 0x493   :  { %v2386_v55 = vpop.f32.mrb[14].mxu1 }
 0x494   :  { %v2389_v56 = vmax.f32 %v2384_v53, 0.0  ;;  %v2865_v57 = vpop.f32.mrb[15].mxu1 }
 0x496   :  { %v2390_v58 = vpack.c.bf16 %v2389_v56, %v2389_v56 }
 0x498   :  { %2883 = vmatmul.mubr.bf16.vlgmr.msra.gmra.mrb[16].mxu1 %v2390_v58 }
 0x56b   :  { %v2496_v60 = vpop.f32.mrb[16].mxu1 }
 0x56c   :  { %v2497_v61 = vadd.f32 %v2797_v59, %v2496_v60  ;;  %v2884_v62 = vpop.f32.mrb[17].mxu1 }
 0x56d   :  { %v2499_v63 = vpop.f32.mrb[18].mxu1 }
 0x56e   :  { %2502 = vst [vmem:[%s3688_s11] sm:$0xff] %v2497_v61  ;;  %v2885_v1 = vpop.f32.mrb[19].mxu1 }
 0x56f   :  { %2507 = vsyncpa [#allocation3], 1 }
 0x570   :  { %2508 = vsyncpa [#allocation5], 1 }

</bundles_post_ra>
